<compile_context>
chip_gen: v6e
topology: v6e:2x2x1
jax: 0.10.0
libtpu: 0.0.40
codegen_flags: <defaults>
</compile_context>

<pallas_src>
import jax
import jax.numpy as jnp
from jax import lax
from jax.experimental import pallas as pl
from jax.experimental.pallas import tpu as pltpu

EPS = 1e-5
LANE = 128


def _round_up(x, m):
    return (x + m - 1) // m * m


# ---------------------------------------------------------------------------
# Kernel 1: one fused GCN conv layer (aggregate-then-transform) + partial
# BatchNorm statistics.
#   z = (A_hat @ X') @ W     with X' = relu(X * scale + shift) when fused
#   stats row-block i = [sum_nodes z, sum_nodes z^2]  (training-mode BN)
# ---------------------------------------------------------------------------
def _gcn_epilogue(w_ref, z_ref, stats_ref, acc_ref):
    @pl.when(pl.program_id(1) == pl.num_programs(1) - 1)
    def _():
        # C x C transform on the MXU: bf16 operands, f32 accumulation.
        z = jnp.dot(acc_ref[...].astype(jnp.bfloat16), w_ref[...],
                    preferred_element_type=jnp.float32)
        z_ref[...] = z.astype(z_ref.dtype)
        # Partial BN statistics for this row block (f32, before the bf16 cast).
        # Padded rows are all-zero and contribute nothing (wrapper divides by
        # the real node count).
        c = z.shape[1]
        s = jnp.sum(z, axis=0, keepdims=True)        # [1, C]
        sq = jnp.sum(z * z, axis=0, keepdims=True)   # [1, C]
        row = lax.broadcasted_iota(jnp.int32, (8, c), 0)
        stats_ref[...] = jnp.where(
            row == 0, jnp.broadcast_to(s, (8, c)),
            jnp.where(row == 1, jnp.broadcast_to(sq, (8, c)), 0.0))


def gcn_layer_kernel(a_ref, x_ref, w_ref, z_ref, stats_ref, acc_ref):
    @pl.when(pl.program_id(1) == 0)
    def _():
        acc_ref[...] = jnp.zeros_like(acc_ref)
    acc_ref[...] += jnp.dot(a_ref[...], x_ref[...],
                            preferred_element_type=jnp.float32)
    _gcn_epilogue(w_ref, z_ref, stats_ref, acc_ref)


def gcn_layer_fused_kernel(a_ref, x_ref, scale_ref, shift_ref, w_ref,
                           z_ref, stats_ref, acc_ref):
    @pl.when(pl.program_id(1) == 0)
    def _():
        acc_ref[...] = jnp.zeros_like(acc_ref)
    # Previous layer's BN + ReLU applied on the streamed X tile (VPU slack
    # under an HBM/MXU-bound loop). Padded rows may become relu(shift) != 0
    # but the corresponding A_hat columns are zero, so they never contribute.
    x = x_ref[...].astype(jnp.float32) * scale_ref[...] + shift_ref[...]
    x = jnp.maximum(x, 0.0).astype(jnp.bfloat16)
    acc_ref[...] += jnp.dot(a_ref[...], x, preferred_element_type=jnp.float32)
    _gcn_epilogue(w_ref, z_ref, stats_ref, acc_ref)


def gcn_layer(a_pad, x_in, w_bf16, *, tile_n, scale=None, shift=None):
    n_pad = a_pad.shape[0]
    c_pad = x_in.shape[1]
    rb = n_pad // tile_n
    kb = n_pad // tile_n

    a_spec = pl.BlockSpec((tile_n, tile_n), lambda i, k: (i, k))
    x_spec = pl.BlockSpec((tile_n, c_pad), lambda i, k: (k, 0))
    w_spec = pl.BlockSpec((c_pad, c_pad), lambda i, k: (0, 0))
    vec_spec = pl.BlockSpec((1, c_pad), lambda i, k: (0, 0))
    z_spec = pl.BlockSpec((tile_n, c_pad), lambda i, k: (i, 0))
    stats_spec = pl.BlockSpec((8, c_pad), lambda i, k: (i, 0))

    if scale is None:
        kernel = gcn_layer_kernel
        args = (a_pad, x_in, w_bf16)
        in_specs = [a_spec, x_spec, w_spec]
    else:
        kernel = gcn_layer_fused_kernel
        args = (a_pad, x_in, scale, shift, w_bf16)
        in_specs = [a_spec, x_spec, vec_spec, vec_spec, w_spec]

    flops = 2 * n_pad * n_pad * c_pad + 2 * n_pad * c_pad * c_pad
    bytes_accessed = (n_pad * n_pad * 2            # A_hat (bf16), read once
                      + rb * n_pad * c_pad * 2     # X streamed once per row block
                      + c_pad * c_pad * 2          # W (bf16)
                      + n_pad * c_pad * 2          # z out (bf16)
                      + rb * 8 * c_pad * 4)        # stats out

    return pl.pallas_call(
        kernel,
        out_shape=(
            jax.ShapeDtypeStruct((n_pad, c_pad), jnp.bfloat16),
            jax.ShapeDtypeStruct((rb * 8, c_pad), jnp.float32),
        ),
        grid_spec=pltpu.PrefetchScalarGridSpec(
            num_scalar_prefetch=0,
            grid=(rb, kb),
            in_specs=in_specs,
            out_specs=[z_spec, stats_spec],
            scratch_shapes=[pltpu.VMEM((tile_n, c_pad), jnp.float32)],
        ),
        compiler_params=pltpu.CompilerParams(
            dimension_semantics=("parallel", "arbitrary"),
            vmem_limit_bytes=32 * 1024 * 1024),
        cost_estimate=pl.CostEstimate(
            flops=flops, transcendentals=0, bytes_accessed=bytes_accessed),
    )(*args)


# ---------------------------------------------------------------------------
# Kernel 2: fused BatchNorm3 (pre-folded scale/shift) + residual + ReLU.
# ---------------------------------------------------------------------------
def bn_residual_relu_kernel(z_ref, scale_ref, shift_ref, res_ref, o_ref):
    h = (z_ref[...].astype(jnp.float32) * scale_ref[...] + shift_ref[...]
         + res_ref[...].astype(jnp.float32))
    o_ref[...] = jnp.maximum(h, 0.0).astype(o_ref.dtype)


def bn_residual_relu(z, scale, shift, residual, *, out_dtype, tile_n):
    n_pad, c_pad = z.shape
    rb = n_pad // tile_n
    row_spec = pl.BlockSpec((tile_n, c_pad), lambda i: (i, 0))
    vec_spec = pl.BlockSpec((1, c_pad), lambda i: (0, 0))
    return pl.pallas_call(
        bn_residual_relu_kernel,
        out_shape=jax.ShapeDtypeStruct((n_pad, c_pad), out_dtype),
        grid=(rb,),
        in_specs=[row_spec, vec_spec, vec_spec, row_spec],
        out_specs=row_spec,
        compiler_params=pltpu.CompilerParams(dimension_semantics=("parallel",)),
    )(z, scale, shift, residual)


# ---------------------------------------------------------------------------
# Glue
# ---------------------------------------------------------------------------
def build_normalized_adjacency(edge_index, num_nodes):
    """Dense D^-1/2 (A + I) D^-1/2 from a [2, E] edge index (plain JAX glue)."""
    src, dst = edge_index[0], edge_index[1]
    a = jnp.zeros((num_nodes, num_nodes), jnp.float32)
    a = a.at[dst, src].add(1.0)                      # A[dst, src] = 1
    # add_remaining_self_loops: only add a self-loop where none exists.
    diag = jnp.diagonal(a)
    a = a + jnp.diag(jnp.where(diag > 0.0, 0.0, 1.0))
    deg = jnp.sum(a, axis=1)
    d_inv_sqrt = jnp.where(deg > 0, lax.rsqrt(deg), 0.0)
    return d_inv_sqrt[:, None] * a * d_inv_sqrt[None, :]


def _bn_scale_shift(stats, gamma, beta, n_real):
    """Tiny cross-row-block reduction of BN partial stats -> fused scale/shift."""
    c_pad = stats.shape[1]
    rb = stats.shape[0] // 8
    st = stats.reshape(rb, 8, c_pad)
    s = jnp.sum(st[:, 0, :], axis=0)
    sq = jnp.sum(st[:, 1, :], axis=0)
    inv_n = 1.0 / float(n_real)
    mean = s * inv_n
    # E[z^2] - E[z]^2 in f32, clamped; a shifted two-pass reduction would be
    # safer for activations with very large means.
    var = jnp.maximum(sq * inv_n - mean * mean, 0.0)   # biased variance
    scale = gamma * lax.rsqrt(var + EPS)               # [1, c_pad]
    shift = beta - scale * mean
    return scale, shift


def _pick_tiling(n, requested_tile):
    """Clamp tile to the graph size, keep >=2 row blocks for megacore when possible."""
    tile_n = min(requested_tile, _round_up(n, 256))
    n_pad = _round_up(n, tile_n)
    if n_pad == tile_n and tile_n >= 512:
        tile_n //= 2          # >= 2 row blocks so the "parallel" axis can shard (v7x)
    return tile_n, n_pad


def bottleneck_forward(x, edge_index, params, *, tile_n=1024):
    n, c_in = x.shape
    c1 = params["w1"].shape[1]
    c2 = params["w2"].shape[1]
    c3 = params["w3"].shape[1]
    assert c3 == c_in, "residual requires in_channels == out_channels * 4"

    tile_n, n_pad = _pick_tiling(n, tile_n)
    c_pad = _round_up(max(c_in, c1, c2, c3), LANE)

    # TODO(synk): for large sparse graphs, replace the dense A_hat matmul with a
    # scalar-prefetched gather-based SpMM (PrefetchScalarGridSpec + neighbor lists).
    a_hat = build_normalized_adjacency(edge_index, n)
    a_pad = jnp.zeros((n_pad, n_pad), jnp.bfloat16)
    a_pad = a_pad.at[:n, :n].set(a_hat.astype(jnp.bfloat16))

    x_pad = jnp.zeros((n_pad, c_pad), jnp.float32).at[:n, :c_in].set(
        x.astype(jnp.float32))
    x_bf16 = x_pad.astype(jnp.bfloat16)   # layer-1 MXU input + bf16 residual stream

    def pad_w(w):
        return jnp.zeros((c_pad, c_pad), jnp.bfloat16).at[
            :w.shape[0], :w.shape[1]].set(w.astype(jnp.bfloat16))

    def pad_v(v):
        v = v.reshape(-1)
        return jnp.zeros((1, c_pad), jnp.float32).at[0, :v.shape[0]].set(v)

    w1, w2, w3 = pad_w(params["w1"]), pad_w(params["w2"]), pad_w(params["w3"])
    g1, be1 = pad_v(params["g1"]), pad_v(params["be1"])
    g2, be2 = pad_v(params["g2"]), pad_v(params["be2"])
    g3, be3 = pad_v(params["g3"]), pad_v(params["be3"])

    # conv1 (BN1 stats fused into the epilogue)
    z1, st1 = gcn_layer(a_pad, x_bf16, w1, tile_n=tile_n)
    sc1, sh1 = _bn_scale_shift(st1, g1, be1, n)

    # conv2 with BN1+ReLU fused into its X input path
    z2, st2 = gcn_layer(a_pad, z1, w2, tile_n=tile_n, scale=sc1, shift=sh1)
    sc2, sh2 = _bn_scale_shift(st2, g2, be2, n)

    # conv3 with BN2+ReLU fused into its X input path
    z3, st3 = gcn_layer(a_pad, z2, w3, tile_n=tile_n, scale=sc2, shift=sh2)
    sc3, sh3 = _bn_scale_shift(st3, g3, be3, n)

    # BN3 + identity residual + ReLU (single HBM pass)
    out = bn_residual_relu(z3, sc3, sh3, x_bf16, out_dtype=jnp.float32,
                           tile_n=tile_n)
    return out[:n, :c3]


def init_params(key, in_channels, out_channels, expansion=4):
    c1, c2, c3 = out_channels, out_channels, out_channels * expansion
    ks = jax.random.split(key, 3)

    def lin(k, fan_in, fan_out):
        scale = 1.0 / jnp.sqrt(jnp.float32(fan_in))
        return jax.random.uniform(k, (fan_in, fan_out), jnp.float32, -scale, scale)

    # GCNConv biases omitted: exactly cancelled by training-mode BN mean subtraction.
    return {
        "w1": lin(ks[0], in_channels, c1),
        "g1": jnp.ones((c1,), jnp.float32),
        "be1": jnp.zeros((c1,), jnp.float32),
        "w2": lin(ks[1], c1, c2),
        "g2": jnp.ones((c2,), jnp.float32),
        "be2": jnp.zeros((c2,), jnp.float32),
        "w3": lin(ks[2], c2, c3),
        "g3": jnp.ones((c3,), jnp.float32),
        "be3": jnp.zeros((c3,), jnp.float32),
    }


if __name__ == "__main__":
    key = jax.random.PRNGKey(0)
    k_x, k_p = jax.random.split(key)

    N = 8                 # nodes
    OUT_CH = 8            # out_channels
    IN_CH = OUT_CH * 4    # in_channels == out_channels * expansion (residual add)

    x = jax.random.normal(k_x, (N, IN_CH), jnp.float32)

    # small bidirectional ring graph, edge_index [2, E]
    idx = jnp.arange(N, dtype=jnp.int32)
    src = jnp.concatenate([idx, (idx + 1) % N])
    dst = jnp.concatenate([(idx + 1) % N, idx])
    edge_index = jnp.stack([src, dst], axis=0)

    # batch vector is unused by the forward pass (kept for interface parity)
    batch = jnp.zeros((N,), jnp.int32)

    params = init_params(k_p, IN_CH, OUT_CH)

    fwd = jax.jit(lambda x_, ei_: bottleneck_forward(x_, ei_, params))
    out = fwd(x, edge_index)
    jax.block_until_ready(out)
    assert out.shape == (N, IN_CH)
    assert bool(jnp.all(jnp.isfinite(out)))
    print("KERNEL_OK")
</pallas_src>

<mosaic_0001>
module attributes {stable_mosaic.version = 11 : i64} {
  func.func private @main(%arg0: i32) attributes {dimension_semantics = [#tpu.dimension_semantics<core_parallel>], iteration_bounds = array<i64: 2>, tpu.core_type = #tpu.core_type<sc_scalar_subcore>, window_params = []} {
    return
  }
}

module attributes {stable_mosaic.version = 11 : i64} {
  func.func private @main(%arg0: i32) attributes {dimension_semantics = [#tpu.dimension_semantics<core_parallel>], iteration_bounds = array<i64: 2>, tpu.core_type = #tpu.core_type<sc_scalar_subcore>, window_params = []} {
    return
  }
}

module attributes {stable_mosaic.version = 11 : i64} {
  func.func @gcn_layer_kernel(%arg0: i32, %arg1: i32, %arg2: memref<256x256xbf16, #tpu.memory_space<vmem>>, %arg3: memref<256x128xbf16, #tpu.memory_space<vmem>>, %arg4: memref<128x128xbf16, #tpu.memory_space<vmem>>, %arg5: memref<256x128xbf16, #tpu.memory_space<vmem>>, %arg6: memref<8x128xf32, #tpu.memory_space<vmem>>, %arg7: memref<256x128xf32, #tpu.memory_space<vmem>>) attributes {dimension_semantics = [#tpu.dimension_semantics<parallel>, #tpu.dimension_semantics<arbitrary>], iteration_bounds = array<i64: 1, 1>, scalar_prefetch = 0 : i64, scratch_operands = 1 : i64, tpu.core_type = #tpu.core_type<tc>, window_params = [{transform_indices = @transform_0, window_bounds = array<i64: 256, 256>}, {transform_indices = @transform_1, window_bounds = array<i64: 256, 128>}, {pipeline_mode = #tpu.pipeline_mode<synchronous>, transform_indices = @transform_2, window_bounds = array<i64: 128, 128>}, {transform_indices = @transform_3, window_bounds = array<i64: 256, 128>}, {transform_indices = @transform_4, window_bounds = array<i64: 8, 128>}]} {
    %c0_i32 = arith.constant 0 : i32
    %0 = arith.cmpi eq, %arg1, %c0_i32 : i32
    %1 = arith.extui %0 : i1 to i32
    %c0_i32_0 = arith.constant 0 : i32
    %2 = arith.cmpi ne, %1, %c0_i32_0 : i32
    scf.if %2 {
      %cst_10 = arith.constant 0.000000e+00 : f32
      %12 = vector.broadcast %cst_10 : f32 to vector<256x128xf32>
      %c0_11 = arith.constant 0 : index
      %c0_12 = arith.constant 0 : index
      %13 = vector.load %arg7[%c0_11, %c0_12] : memref<256x128xf32, #tpu.memory_space<vmem>>, vector<256x128xf32>
      tpu.vector_store %arg7[%c0_11, %c0_12], %12 {strides = array<i32>} : memref<256x128xf32, #tpu.memory_space<vmem>>, vector<256x128xf32>,
    } else {
    }
    %c0 = arith.constant 0 : index
    %c0_1 = arith.constant 0 : index
    %3 = vector.load %arg7[%c0, %c0_1] : memref<256x128xf32, #tpu.memory_space<vmem>>, vector<256x128xf32>
    %c0_2 = arith.constant 0 : index
    %c0_3 = arith.constant 0 : index
    %4 = vector.load %arg2[%c0_2, %c0_3] : memref<256x256xbf16, #tpu.memory_space<vmem>>, vector<256x256xbf16>
    %c0_4 = arith.constant 0 : index
    %c0_5 = arith.constant 0 : index
    %5 = vector.load %arg3[%c0_4, %c0_5] : memref<256x128xbf16, #tpu.memory_space<vmem>>, vector<256x128xbf16>
    %cst = arith.constant dense<0.000000e+00> : vector<256x128xf32>
    %6 = tpu.matmul %4, %5, %cst {dimension_numbers = #tpu.dot_dimension_numbers<[1], [0], [0], [1], [0, 0, 1, 1], [], []>} : vector<256x256xbf16>, vector<256x128xbf16>, vector<256x128xf32> -> vector<256x128xf32>
    %7 = arith.addf %3, %6 : vector<256x128xf32>
    %c0_6 = arith.constant 0 : index
    %c0_7 = arith.constant 0 : index
    %8 = vector.load %arg7[%c0_6, %c0_7] : memref<256x128xf32, #tpu.memory_space<vmem>>, vector<256x128xf32>
    tpu.vector_store %arg7[%c0_6, %c0_7], %7 {strides = array<i32>} : memref<256x128xf32, #tpu.memory_space<vmem>>, vector<256x128xf32>,
    %c0_i32_8 = arith.constant 0 : i32
    %9 = arith.cmpi eq, %arg1, %c0_i32_8 : i32
    %10 = arith.extui %9 : i1 to i32
    %c0_i32_9 = arith.constant 0 : i32
    %11 = arith.cmpi ne, %10, %c0_i32_9 : i32
    scf.if %11 {
      %c0_10 = arith.constant 0 : index
      %c0_11 = arith.constant 0 : index
      %12 = vector.load %arg7[%c0_10, %c0_11] : memref<256x128xf32, #tpu.memory_space<vmem>>, vector<256x128xf32>
      %13 = arith.truncf %12 : vector<256x128xf32> to vector<256x128xbf16>
      %c0_12 = arith.constant 0 : index
      %c0_13 = arith.constant 0 : index
      %14 = vector.load %arg4[%c0_12, %c0_13] : memref<128x128xbf16, #tpu.memory_space<vmem>>, vector<128x128xbf16>
      %cst_14 = arith.constant dense<0.000000e+00> : vector<256x128xf32>
      %15 = tpu.matmul %13, %14, %cst_14 {dimension_numbers = #tpu.dot_dimension_numbers<[1], [0], [0], [1], [0, 0, 1, 1], [], []>} : vector<256x128xbf16>, vector<128x128xbf16>, vector<256x128xf32> -> vector<256x128xf32>
      %16 = arith.truncf %15 : vector<256x128xf32> to vector<256x128xbf16>
      %c0_15 = arith.constant 0 : index
      %c0_16 = arith.constant 0 : index
      %17 = vector.load %arg5[%c0_15, %c0_16] : memref<256x128xbf16, #tpu.memory_space<vmem>>, vector<256x128xbf16>
      tpu.vector_store %arg5[%c0_15, %c0_16], %16 {strides = array<i32>} : memref<256x128xbf16, #tpu.memory_space<vmem>>, vector<256x128xbf16>,
      %cst_17 = arith.constant dense<0.000000e+00> : vector<128xf32>
      %18 = vector.multi_reduction <add>, %15, %cst_17 [0] : vector<256x128xf32> to vector<128xf32>
      %19 = vector.shape_cast %18 : vector<128xf32> to vector<1x128xf32>
      %20 = arith.mulf %15, %15 : vector<256x128xf32>
      %cst_18 = arith.constant dense<0.000000e+00> : vector<128xf32>
      %21 = vector.multi_reduction <add>, %20, %cst_18 [0] : vector<256x128xf32> to vector<128xf32>
      %22 = vector.shape_cast %21 : vector<128xf32> to vector<1x128xf32>
      %23 = tpu.iota {dimensions = array<i32: 0>} : vector<8x128xi32>
      %c0_i32_19 = arith.constant 0 : i32
      %24 = vector.broadcast %c0_i32_19 : i32 to vector<8x128xi32>
      %25 = arith.cmpi eq, %23, %24 : vector<8x128xi32>
      %26 = vector.shape_cast %19 : vector<1x128xf32> to vector<1x128xf32>
      %27 = vector.broadcast %26 : vector<1x128xf32> to vector<8x128xf32>
      %c1_i32 = arith.constant 1 : i32
      %28 = vector.broadcast %c1_i32 : i32 to vector<8x128xi32>
      %29 = arith.cmpi eq, %23, %28 : vector<8x128xi32>
      %30 = vector.shape_cast %22 : vector<1x128xf32> to vector<1x128xf32>
      %31 = vector.broadcast %30 : vector<1x128xf32> to vector<8x128xf32>
      %cst_20 = arith.constant 0.000000e+00 : f32
      %32 = vector.broadcast %cst_20 : f32 to vector<8x128xf32>
      %33 = arith.select %29, %31, %32 : vector<8x128xi1>, vector<8x128xf32>
      %34 = arith.select %25, %27, %33 : vector<8x128xi1>, vector<8x128xf32>
      %c0_21 = arith.constant 0 : index
      %c0_22 = arith.constant 0 : index
      %35 = vector.load %arg6[%c0_21, %c0_22] : memref<8x128xf32, #tpu.memory_space<vmem>>, vector<8x128xf32>
      tpu.vector_store %arg6[%c0_21, %c0_22], %34 {strides = array<i32>} : memref<8x128xf32, #tpu.memory_space<vmem>>, vector<8x128xf32>,
    } else {
    }
    return
  }
  func.func @transform_0(%arg0: i32, %arg1: i32) -> (i32, i32) {
    %c0_i32 = arith.constant 0 : i32
    return %arg0, %arg1 : i32, i32
  }
  func.func @transform_1(%arg0: i32, %arg1: i32) -> (i32, i32) {
    %c0_i32 = arith.constant 0 : i32
    %c0_i32_0 = arith.constant 0 : i32
    return %arg1, %c0_i32 : i32, i32
  }
  func.func @transform_2(%arg0: i32, %arg1: i32) -> (i32, i32) {
    %c0_i32 = arith.constant 0 : i32
    %c0_i32_0 = arith.constant 0 : i32
    %c0_i32_1 = arith.constant 0 : i32
    return %c0_i32, %c0_i32_0 : i32, i32
  }
  func.func @transform_3(%arg0: i32, %arg1: i32) -> (i32, i32) {
    %c0_i32 = arith.constant 0 : i32
    %c0_i32_0 = arith.constant 0 : i32
    return %arg0, %c0_i32 : i32, i32
  }
  func.func @transform_4(%arg0: i32, %arg1: i32) -> (i32, i32) {
    %c0_i32 = arith.constant 0 : i32
    %c0_i32_0 = arith.constant 0 : i32
    return %arg0, %c0_i32 : i32, i32
  }
}

module attributes {stable_mosaic.version = 11 : i64} {
  func.func @gcn_layer_fused_kernel(%arg0: i32, %arg1: i32, %arg2: memref<256x256xbf16, #tpu.memory_space<vmem>>, %arg3: memref<256x128xbf16, #tpu.memory_space<vmem>>, %arg4: memref<1x128xf32, #tpu.memory_space<vmem>>, %arg5: memref<1x128xf32, #tpu.memory_space<vmem>>, %arg6: memref<128x128xbf16, #tpu.memory_space<vmem>>, %arg7: memref<256x128xbf16, #tpu.memory_space<vmem>>, %arg8: memref<8x128xf32, #tpu.memory_space<vmem>>, %arg9: memref<256x128xf32, #tpu.memory_space<vmem>>) attributes {dimension_semantics = [#tpu.dimension_semantics<parallel>, #tpu.dimension_semantics<arbitrary>], iteration_bounds = array<i64: 1, 1>, scalar_prefetch = 0 : i64, scratch_operands = 1 : i64, tpu.core_type = #tpu.core_type<tc>, window_params = [{transform_indices = @transform_0, window_bounds = array<i64: 256, 256>}, {transform_indices = @transform_1, window_bounds = array<i64: 256, 128>}, {pipeline_mode = #tpu.pipeline_mode<synchronous>, transform_indices = @transform_2, window_bounds = array<i64: 1, 128>}, {pipeline_mode = #tpu.pipeline_mode<synchronous>, transform_indices = @transform_3, window_bounds = array<i64: 1, 128>}, {pipeline_mode = #tpu.pipeline_mode<synchronous>, transform_indices = @transform_4, window_bounds = array<i64: 128, 128>}, {transform_indices = @transform_5, window_bounds = array<i64: 256, 128>}, {transform_indices = @transform_6, window_bounds = array<i64: 8, 128>}]} {
    %c0_i32 = arith.constant 0 : i32
    %0 = arith.cmpi eq, %arg1, %c0_i32 : i32
    %1 = arith.extui %0 : i1 to i32
    %c0_i32_0 = arith.constant 0 : i32
    %2 = arith.cmpi ne, %1, %c0_i32_0 : i32
    scf.if %2 {
      %cst_15 = arith.constant 0.000000e+00 : f32
      %22 = vector.broadcast %cst_15 : f32 to vector<256x128xf32>
      %c0_16 = arith.constant 0 : index
      %c0_17 = arith.constant 0 : index
      %23 = vector.load %arg9[%c0_16, %c0_17] : memref<256x128xf32, #tpu.memory_space<vmem>>, vector<256x128xf32>
      tpu.vector_store %arg9[%c0_16, %c0_17], %22 {strides = array<i32>} : memref<256x128xf32, #tpu.memory_space<vmem>>, vector<256x128xf32>,
    } else {
    }
    %c0 = arith.constant 0 : index
    %c0_1 = arith.constant 0 : index
    %3 = vector.load %arg3[%c0, %c0_1] : memref<256x128xbf16, #tpu.memory_space<vmem>>, vector<256x128xbf16>
    %4 = arith.extf %3 : vector<256x128xbf16> to vector<256x128xf32>
    %c0_2 = arith.constant 0 : index
    %c0_3 = arith.constant 0 : index
    %5 = vector.load %arg4[%c0_2, %c0_3] : memref<1x128xf32, #tpu.memory_space<vmem>>, vector<1x128xf32>
    %6 = vector.broadcast %5 : vector<1x128xf32> to vector<256x128xf32>
    %7 = arith.mulf %4, %6 : vector<256x128xf32>
    %c0_4 = arith.constant 0 : index
    %c0_5 = arith.constant 0 : index
    %8 = vector.load %arg5[%c0_4, %c0_5] : memref<1x128xf32, #tpu.memory_space<vmem>>, vector<1x128xf32>
    %9 = vector.broadcast %8 : vector<1x128xf32> to vector<256x128xf32>
    %10 = arith.addf %7, %9 : vector<256x128xf32>
    %cst = arith.constant 0.000000e+00 : f32
    %11 = vector.broadcast %cst : f32 to vector<256x128xf32>
    %12 = arith.maximumf %10, %11 : vector<256x128xf32>
    %13 = arith.truncf %12 : vector<256x128xf32> to vector<256x128xbf16>
    %c0_6 = arith.constant 0 : index
    %c0_7 = arith.constant 0 : index
    %14 = vector.load %arg9[%c0_6, %c0_7] : memref<256x128xf32, #tpu.memory_space<vmem>>, vector<256x128xf32>
    %c0_8 = arith.constant 0 : index
    %c0_9 = arith.constant 0 : index
    %15 = vector.load %arg2[%c0_8, %c0_9] : memref<256x256xbf16, #tpu.memory_space<vmem>>, vector<256x256xbf16>
    %cst_10 = arith.constant dense<0.000000e+00> : vector<256x128xf32>
    %16 = tpu.matmul %15, %13, %cst_10 {dimension_numbers = #tpu.dot_dimension_numbers<[1], [0], [0], [1], [0, 0, 1, 1], [], []>} : vector<256x256xbf16>, vector<256x128xbf16>, vector<256x128xf32> -> vector<256x128xf32>
    %17 = arith.addf %14, %16 : vector<256x128xf32>
    %c0_11 = arith.constant 0 : index
    %c0_12 = arith.constant 0 : index
    %18 = vector.load %arg9[%c0_11, %c0_12] : memref<256x128xf32, #tpu.memory_space<vmem>>, vector<256x128xf32>
    tpu.vector_store %arg9[%c0_11, %c0_12], %17 {strides = array<i32>} : memref<256x128xf32, #tpu.memory_space<vmem>>, vector<256x128xf32>,
    %c0_i32_13 = arith.constant 0 : i32
    %19 = arith.cmpi eq, %arg1, %c0_i32_13 : i32
    %20 = arith.extui %19 : i1 to i32
    %c0_i32_14 = arith.constant 0 : i32
    %21 = arith.cmpi ne, %20, %c0_i32_14 : i32
    scf.if %21 {
      %c0_15 = arith.constant 0 : index
      %c0_16 = arith.constant 0 : index
      %22 = vector.load %arg9[%c0_15, %c0_16] : memref<256x128xf32, #tpu.memory_space<vmem>>, vector<256x128xf32>
      %23 = arith.truncf %22 : vector<256x128xf32> to vector<256x128xbf16>
      %c0_17 = arith.constant 0 : index
      %c0_18 = arith.constant 0 : index
      %24 = vector.load %arg6[%c0_17, %c0_18] : memref<128x128xbf16, #tpu.memory_space<vmem>>, vector<128x128xbf16>
      %cst_19 = arith.constant dense<0.000000e+00> : vector<256x128xf32>
      %25 = tpu.matmul %23, %24, %cst_19 {dimension_numbers = #tpu.dot_dimension_numbers<[1], [0], [0], [1], [0, 0, 1, 1], [], []>} : vector<256x128xbf16>, vector<128x128xbf16>, vector<256x128xf32> -> vector<256x128xf32>
      %26 = arith.truncf %25 : vector<256x128xf32> to vector<256x128xbf16>
      %c0_20 = arith.constant 0 : index
      %c0_21 = arith.constant 0 : index
      %27 = vector.load %arg7[%c0_20, %c0_21] : memref<256x128xbf16, #tpu.memory_space<vmem>>, vector<256x128xbf16>
      tpu.vector_store %arg7[%c0_20, %c0_21], %26 {strides = array<i32>} : memref<256x128xbf16, #tpu.memory_space<vmem>>, vector<256x128xbf16>,
      %cst_22 = arith.constant dense<0.000000e+00> : vector<128xf32>
      %28 = vector.multi_reduction <add>, %25, %cst_22 [0] : vector<256x128xf32> to vector<128xf32>
      %29 = vector.shape_cast %28 : vector<128xf32> to vector<1x128xf32>
      %30 = arith.mulf %25, %25 : vector<256x128xf32>
      %cst_23 = arith.constant dense<0.000000e+00> : vector<128xf32>
      %31 = vector.multi_reduction <add>, %30, %cst_23 [0] : vector<256x128xf32> to vector<128xf32>
      %32 = vector.shape_cast %31 : vector<128xf32> to vector<1x128xf32>
      %33 = tpu.iota {dimensions = array<i32: 0>} : vector<8x128xi32>
      %c0_i32_24 = arith.constant 0 : i32
      %34 = vector.broadcast %c0_i32_24 : i32 to vector<8x128xi32>
      %35 = arith.cmpi eq, %33, %34 : vector<8x128xi32>
      %36 = vector.shape_cast %29 : vector<1x128xf32> to vector<1x128xf32>
      %37 = vector.broadcast %36 : vector<1x128xf32> to vector<8x128xf32>
      %c1_i32 = arith.constant 1 : i32
      %38 = vector.broadcast %c1_i32 : i32 to vector<8x128xi32>
      %39 = arith.cmpi eq, %33, %38 : vector<8x128xi32>
      %40 = vector.shape_cast %32 : vector<1x128xf32> to vector<1x128xf32>
      %41 = vector.broadcast %40 : vector<1x128xf32> to vector<8x128xf32>
      %cst_25 = arith.constant 0.000000e+00 : f32
      %42 = vector.broadcast %cst_25 : f32 to vector<8x128xf32>
      %43 = arith.select %39, %41, %42 : vector<8x128xi1>, vector<8x128xf32>
      %44 = arith.select %35, %37, %43 : vector<8x128xi1>, vector<8x128xf32>
      %c0_26 = arith.constant 0 : index
      %c0_27 = arith.constant 0 : index
      %45 = vector.load %arg8[%c0_26, %c0_27] : memref<8x128xf32, #tpu.memory_space<vmem>>, vector<8x128xf32>
      tpu.vector_store %arg8[%c0_26, %c0_27], %44 {strides = array<i32>} : memref<8x128xf32, #tpu.memory_space<vmem>>, vector<8x128xf32>,
    } else {
    }
    return
  }
  func.func @transform_0(%arg0: i32, %arg1: i32) -> (i32, i32) {
    %c0_i32 = arith.constant 0 : i32
    return %arg0, %arg1 : i32, i32
  }
  func.func @transform_1(%arg0: i32, %arg1: i32) -> (i32, i32) {
    %c0_i32 = arith.constant 0 : i32
    %c0_i32_0 = arith.constant 0 : i32
    return %arg1, %c0_i32 : i32, i32
  }
  func.func @transform_2(%arg0: i32, %arg1: i32) -> (i32, i32) {
    %c0_i32 = arith.constant 0 : i32
    %c0_i32_0 = arith.constant 0 : i32
    %c0_i32_1 = arith.constant 0 : i32
    return %c0_i32, %c0_i32_0 : i32, i32
  }
  func.func @transform_3(%arg0: i32, %arg1: i32) -> (i32, i32) {
    %c0_i32 = arith.constant 0 : i32
    %c0_i32_0 = arith.constant 0 : i32
    %c0_i32_1 = arith.constant 0 : i32
    return %c0_i32, %c0_i32_0 : i32, i32
  }
  func.func @transform_4(%arg0: i32, %arg1: i32) -> (i32, i32) {
    %c0_i32 = arith.constant 0 : i32
    %c0_i32_0 = arith.constant 0 : i32
    %c0_i32_1 = arith.constant 0 : i32
    return %c0_i32, %c0_i32_0 : i32, i32
  }
  func.func @transform_5(%arg0: i32, %arg1: i32) -> (i32, i32) {
    %c0_i32 = arith.constant 0 : i32
    %c0_i32_0 = arith.constant 0 : i32
    return %arg0, %c0_i32 : i32, i32
  }
  func.func @transform_6(%arg0: i32, %arg1: i32) -> (i32, i32) {
    %c0_i32 = arith.constant 0 : i32
    %c0_i32_0 = arith.constant 0 : i32
    return %arg0, %c0_i32 : i32, i32
  }
}

module attributes {stable_mosaic.version = 11 : i64} {
  func.func @bn_residual_relu_kernel(%arg0: i32, %arg1: memref<256x128xbf16, #tpu.memory_space<vmem>>, %arg2: memref<1x128xf32, #tpu.memory_space<vmem>>, %arg3: memref<1x128xf32, #tpu.memory_space<vmem>>, %arg4: memref<256x128xbf16, #tpu.memory_space<vmem>>, %arg5: memref<256x128xf32, #tpu.memory_space<vmem>>) attributes {dimension_semantics = [#tpu.dimension_semantics<parallel>], iteration_bounds = array<i64: 1>, scalar_prefetch = 0 : i64, scratch_operands = 0 : i64, tpu.core_type = #tpu.core_type<tc>, window_params = [{transform_indices = @transform_0, window_bounds = array<i64: 256, 128>}, {pipeline_mode = #tpu.pipeline_mode<synchronous>, transform_indices = @transform_1, window_bounds = array<i64: 1, 128>}, {pipeline_mode = #tpu.pipeline_mode<synchronous>, transform_indices = @transform_2, window_bounds = array<i64: 1, 128>}, {transform_indices = @transform_3, window_bounds = array<i64: 256, 128>}, {transform_indices = @transform_4, window_bounds = array<i64: 256, 128>}]} {
    %c0 = arith.constant 0 : index
    %c0_0 = arith.constant 0 : index
    %0 = vector.load %arg1[%c0, %c0_0] : memref<256x128xbf16, #tpu.memory_space<vmem>>, vector<256x128xbf16>
    %1 = arith.extf %0 : vector<256x128xbf16> to vector<256x128xf32>
    %c0_1 = arith.constant 0 : index
    %c0_2 = arith.constant 0 : index
    %2 = vector.load %arg2[%c0_1, %c0_2] : memref<1x128xf32, #tpu.memory_space<vmem>>, vector<1x128xf32>
    %3 = vector.broadcast %2 : vector<1x128xf32> to vector<256x128xf32>
    %4 = arith.mulf %1, %3 : vector<256x128xf32>
    %c0_3 = arith.constant 0 : index
    %c0_4 = arith.constant 0 : index
    %5 = vector.load %arg3[%c0_3, %c0_4] : memref<1x128xf32, #tpu.memory_space<vmem>>, vector<1x128xf32>
    %6 = vector.broadcast %5 : vector<1x128xf32> to vector<256x128xf32>
    %7 = arith.addf %4, %6 : vector<256x128xf32>
    %c0_5 = arith.constant 0 : index
    %c0_6 = arith.constant 0 : index
    %8 = vector.load %arg4[%c0_5, %c0_6] : memref<256x128xbf16, #tpu.memory_space<vmem>>, vector<256x128xbf16>
    %9 = arith.extf %8 : vector<256x128xbf16> to vector<256x128xf32>
    %10 = arith.addf %7, %9 : vector<256x128xf32>
    %cst = arith.constant 0.000000e+00 : f32
    %11 = vector.broadcast %cst : f32 to vector<256x128xf32>
    %12 = arith.maximumf %10, %11 : vector<256x128xf32>
    %c0_7 = arith.constant 0 : index
    %c0_8 = arith.constant 0 : index
    %13 = vector.load %arg5[%c0_7, %c0_8] : memref<256x128xf32, #tpu.memory_space<vmem>>, vector<256x128xf32>
    tpu.vector_store %arg5[%c0_7, %c0_8], %12 {strides = array<i32>} : memref<256x128xf32, #tpu.memory_space<vmem>>, vector<256x128xf32>,
    return
  }
  func.func @transform_0(%arg0: i32) -> (i32, i32) {
    %c0_i32 = arith.constant 0 : i32
    %c0_i32_0 = arith.constant 0 : i32
    return %arg0, %c0_i32 : i32, i32
  }
  func.func @transform_1(%arg0: i32) -> (i32, i32) {
    %c0_i32 = arith.constant 0 : i32
    %c0_i32_0 = arith.constant 0 : i32
    %c0_i32_1 = arith.constant 0 : i32
    return %c0_i32, %c0_i32_0 : i32, i32
  }
  func.func @transform_2(%arg0: i32) -> (i32, i32) {
    %c0_i32 = arith.constant 0 : i32
    %c0_i32_0 = arith.constant 0 : i32
    %c0_i32_1 = arith.constant 0 : i32
    return %c0_i32, %c0_i32_0 : i32, i32
  }
  func.func @transform_3(%arg0: i32) -> (i32, i32) {
    %c0_i32 = arith.constant 0 : i32
    %c0_i32_0 = arith.constant 0 : i32
    return %arg0, %c0_i32 : i32, i32
  }
  func.func @transform_4(%arg0: i32) -> (i32, i32) {
    %c0_i32 = arith.constant 0 : i32
    %c0_i32_0 = arith.constant 0 : i32
    return %arg0, %c0_i32 : i32, i32
  }
}

</mosaic_0001>

<bundles_post_ra>
// kernel: _lambda_.4
= control target key start
LH: loop header
LB: loop body
LE: loop exit
PB: predicated region body
PF: predicated region fallthrough
CT: control target
= control target key end

     0   :  { %s1918_s1 = inlined_call_operand.vmem [shape: bf16[256,128], index: 1, kind: input, shape index: {}]   ;;  %s1919_s0 = inlined_call_operand.vmem [shape: bf16[256,256], index: 0, kind: input, shape index: {}]   ;;  %s1920_s2 = inlined_call_operand.vmem [shape: bf16[128,128], index: 2, kind: input, shape index: {}]   ;;  %s1921_s3 = inlined_call_operand.vmem [shape: bf16[256,128], index: 3, kind: output, shape index: {0}]   ;;  %s1922_s4 = inlined_call_operand.vmem [shape: f32[8,128], index: 4, kind: output, shape index: {1}]  }
   0x1   :  { %v1602_v0 = vld [vmem:[%s1918_s1 + $0x78] sm:$0xff]   ;;  %v1604_v2 = vld [vmem:[%s1918_s1 + $0x70] sm:$0xff]   ;;  %v1606_v4 = vld [vmem:[%s1918_s1 + $0x68] sm:$0xff]  }
   0x2   :  { %v1603_v1 = vld [vmem:[%s1918_s1 + $0x38] sm:$0xff]   ;;  %1402 = vmatprep.subr.bf16.mxu0 %v1602_v0  ;;  %1586 = vmatprep.subr.bf16.mxu1 %v1602_v0  ;;  %v1605_v3 = vld [vmem:[%s1918_s1 + $0x30] sm:$0xff]   ;;  %v1607_v5 = vld [vmem:[%s1918_s1 + $0x28] sm:$0xff]  }
   0x3   :  { %1403 = vmatpush3.bf16.msra.mxu0 %v1603_v1  ;;  %1594 = vmatpush3.bf16.msra.mxu1 %v1603_v1  ;;  %v1608_v6 = vld [vmem:[%s1918_s1 + $0x60] sm:$0xff]   ;;  %v1610_v8 = vld [vmem:[%s1918_s1 + $0x58] sm:$0xff]   ;;  %v1612_v10 = vld [vmem:[%s1918_s1 + $0x50] sm:$0xff]  }
   0x4   :  { %1404 = vmatprep.subr.bf16.mxu0 %v1604_v2  ;;  %1587 = vmatprep.subr.bf16.mxu1 %v1604_v2  ;;  %v1609_v7 = vld [vmem:[%s1918_s1 + $0x20] sm:$0xff]   ;;  %v1611_v9 = vld [vmem:[%s1918_s1 + $0x18] sm:$0xff]   ;;  %v1613_v12 = vld [vmem:[%s1918_s1 + $0x10] sm:$0xff]  }
   0x5   :  { %v1620_v11 = vld [vmem:[%s1919_s0 + $0x4] ss:$8 sps:$4 sm:$0xff]   ;;  %v1618_v17 = vld [vmem:[%s1919_s0] ss:$8 sps:$4 sm:$0xff]   ;;  %v1621_v19 = vld [vmem:[%s1919_s0 + $0x14] ss:$8 sps:$4 sm:$0xff]  }
   0x6   :  { %437 = vmatprep.mubr.bf16.mxu0 %v1620_v11  ;;  %v1614_v13 = vld [vmem:[%s1918_s1 + $0x48] sm:$0xff]   ;;  %v1616_v15 = vld [vmem:[%s1918_s1 + $0x40] sm:$0xff]   ;;  %v1654_v21 = vld [vmem:[%s1919_s0 + $0xd4] ss:$8 sps:$4 sm:$0xff]  }
   0x7   :  { %1405 = vmatpush3.bf16.msra.mxu0 %v1605_v3  ;;  %1595 = vmatpush3.bf16.msra.mxu1 %v1605_v3  ;;  %v1615_v14 = vld [vmem:[%s1918_s1 + $0x8] sm:$0xff]   ;;  %v1617_v16 = vld [vmem:[%s1918_s1] sm:$0xff]   ;;  %v1623_v22 = vld [vmem:[%s1919_s0 + $0x10] ss:$8 sps:$4 sm:$0xff]  }
   0x8   :  { %1406 = vmatprep.subr.bf16.mxu0 %v1606_v4  ;;  %1588 = vmatprep.subr.bf16.mxu1 %v1606_v4  ;;  %v1650_v18 = vld [vmem:[%s1919_s0 + $0xc4] ss:$8 sps:$4 sm:$0xff]   ;;  %v1648_v20 = vld [vmem:[%s1919_s0 + $0xc0] ss:$8 sps:$4 sm:$0xff]   ;;  %v1656_v24 = vld [vmem:[%s1919_s0 + $0xd0] ss:$8 sps:$4 sm:$0xff]  }
   0x9   :  { %533 = vmatprep.mubr.bf16.mxu1 %v1650_v18  ;;  %v1624_v23 = vld [vmem:[%s1919_s0 + $0x24] ss:$8 sps:$4 sm:$0xff]   ;;  %v1666_v25 = vld [vmem:[%s1920_s2 + $0x38] sm:$0xff]   ;;  %v1667_v26 = vld [vmem:[%s1920_s2 + $0x30] sm:$0xff]  }
   0xa   :  { %v1660_v27 = vld [vmem:[%s1919_s0 + $0xe4] ss:$8 sps:$4 sm:$0xff]   ;;  %v1626_v29 = vld [vmem:[%s1919_s0 + $0x20] ss:$8 sps:$4 sm:$0xff]   ;;  %v1627_v31 = vld [vmem:[%s1919_s0 + $0x34] ss:$8 sps:$4 sm:$0xff]  }
   0xb   :  { %1407 = vmatpush3.bf16.msra.mxu0 %v1607_v5  ;;  %1596 = vmatpush3.bf16.msra.mxu1 %v1607_v5  ;;  %v1668_v28 = vld [vmem:[%s1920_s2 + $0x28] sm:$0xff]   ;;  %v1669_v30 = vld [vmem:[%s1920_s2 + $0x20] sm:$0xff]   ;;  %v1663_v33 = vld [vmem:[%s1919_s0 + $0xf4] ss:$8 sps:$4 sm:$0xff]  }
   0xc   :  { %1408 = vmatprep.subr.bf16.mxu0 %v1608_v6  ;;  %1589 = vmatprep.subr.bf16.mxu1 %v1608_v6  ;;  %v1662_v32 = vld [vmem:[%s1919_s0 + $0xe0] ss:$8 sps:$4 sm:$0xff]   ;;  %v1629_v34 = vld [vmem:[%s1919_s0 + $0x30] ss:$8 sps:$4 sm:$0xff]   ;;  %v1630_v35 = vld [vmem:[%s1919_s0 + $0x44] ss:$8 sps:$4 sm:$0xff]  }
   0xd   :  { %v1665_v36 = vld [vmem:[%s1919_s0 + $0xf0] ss:$8 sps:$4 sm:$0xff]   ;;  %v1632_v37 = vld [vmem:[%s1919_s0 + $0x40] ss:$8 sps:$4 sm:$0xff]   ;;  %v1633_v38 = vld [vmem:[%s1919_s0 + $0x54] ss:$8 sps:$4 sm:$0xff]  }
   0xe   :  { %v1635_v39 = vld [vmem:[%s1919_s0 + $0x50] ss:$8 sps:$4 sm:$0xff]   ;;  %v1636_v40 = vld [vmem:[%s1919_s0 + $0x64] ss:$8 sps:$4 sm:$0xff]   ;;  %v1638_v41 = vld [vmem:[%s1919_s0 + $0x60] ss:$8 sps:$4 sm:$0xff]  }
   0xf   :  { %1409 = vmatpush3.bf16.msra.mxu0 %v1609_v7  ;;  %1597 = vmatpush3.bf16.msra.mxu1 %v1609_v7  ;;  %v1639_v42 = vld [vmem:[%s1919_s0 + $0x74] ss:$8 sps:$4 sm:$0xff]   ;;  %v1641_v43 = vld [vmem:[%s1919_s0 + $0x70] ss:$8 sps:$4 sm:$0xff]   ;;  %v1642_v44 = vld [vmem:[%s1919_s0 + $0x84] ss:$8 sps:$4 sm:$0xff]  }
  0x10   :  { %1410 = vmatprep.subr.bf16.mxu0 %v1610_v8  ;;  %1590 = vmatprep.subr.bf16.mxu1 %v1610_v8  ;;  %v1644_v45 = vld [vmem:[%s1919_s0 + $0x80] ss:$8 sps:$4 sm:$0xff]   ;;  %v1645_v46 = vld [vmem:[%s1919_s0 + $0x94] ss:$8 sps:$4 sm:$0xff]   ;;  %v1647_v48 = vld [vmem:[%s1919_s0 + $0x90] ss:$8 sps:$4 sm:$0xff]  }
  0x11   :  { %v1670_v47 = vld [vmem:[%s1920_s2 + $0x18] sm:$0xff]   ;;  %v1651_v49 = vld [vmem:[%s1919_s0 + $0xa4] ss:$8 sps:$4 sm:$0xff]   ;;  %v1671_v50 = vld [vmem:[%s1920_s2 + $0x10] sm:$0xff]  }
  0x12   :  { %v1672_v51 = vld [vmem:[%s1920_s2 + $0x8] sm:$0xff]   ;;  %v1657_v53 = vld [vmem:[%s1919_s0 + $0xb4] ss:$8 sps:$4 sm:$0xff]   ;;  %v1673_v54 = vld [vmem:[%s1920_s2] sm:$0xff]  }
  0x13   :  { %1411 = vmatpush3.bf16.msra.mxu0 %v1611_v9  ;;  %1598 = vmatpush3.bf16.msra.mxu1 %v1611_v9  ;;  %v1653_v52 = vld [vmem:[%s1919_s0 + $0xa0] ss:$8 sps:$4 sm:$0xff]   ;;  %v1659_v55 = vld [vmem:[%s1919_s0 + $0xb0] ss:$8 sps:$4 sm:$0xff]  }
  0x14   :  { %1412 = vmatprep.subr.bf16.mxu0 %v1612_v10  ;;  %1591 = vmatprep.subr.bf16.mxu1 %v1612_v10 }
  0x17   :  { %1413 = vmatpush3.bf16.msra.mxu0 %v1613_v12  ;;  %1599 = vmatpush3.bf16.msra.mxu1 %v1613_v12 }
  0x18   :  { %1414 = vmatprep.subr.bf16.mxu0 %v1614_v13  ;;  %1592 = vmatprep.subr.bf16.mxu1 %v1614_v13 }
  0x1b   :  { %1415 = vmatpush3.bf16.msra.mxu0 %v1615_v14  ;;  %1600 = vmatpush3.bf16.msra.mxu1 %v1615_v14 }
  0x1c   :  { %1416 = vmatprep.subr.bf16.mxu0 %v1616_v15  ;;  %1593 = vmatprep.subr.bf16.mxu1 %v1616_v15 }
  0x1f   :  { %1417 = vmatpush3.bf16.msra.mxu0 %v1617_v16  ;;  %1601 = vmatpush3.bf16.msra.mxu1 %v1617_v16 }
  0x20   :  { %1538 = vmatprep.subr.bf16.mxu1 %v1666_v25 }
  0x22   :  { %438 = vmatmul.mubr.bf16.vlgmr.msra.gmra.mxu0 %v1618_v17  ;;  %534 = vmatmul.mubr.bf16.vlgmr.msra.gmra.mxu1 %v1648_v20 }
  0x23   :  { %445 = vmatprep.mubr.bf16.mxu0 %v1621_v19  ;;  %541 = vmatprep.mubr.bf16.mxu1 %v1654_v21 }
  0x24   :  { %1539 = vmatpush3.bf16.msra.mxu1 %v1666_v25 }
  0x25   :  { %1540 = vmatprep.subr.bf16.mxu1 %v1667_v26 }
  0x28   :  { %1541 = vmatpush3.bf16.msra.mxu1 %v1667_v26 }
  0x29   :  { %1542 = vmatprep.subr.bf16.mxu1 %v1668_v28 }
  0x2a   :  { %446 = vmatmul.mubr.bf16.gmra.mxu0 %v1623_v22  ;;  %542 = vmatmul.mubr.bf16.gmra.mxu1 %v1656_v24 }
  0x2b   :  { %453 = vmatprep.mubr.bf16.mxu0 %v1624_v23  ;;  %549 = vmatprep.mubr.bf16.mxu1 %v1660_v27 }
  0x2c   :  { %1543 = vmatpush3.bf16.msra.mxu1 %v1668_v28 }
  0x2d   :  { %1544 = vmatprep.subr.bf16.mxu1 %v1669_v30 }
  0x30   :  { %1545 = vmatpush3.bf16.msra.mxu1 %v1669_v30 }
  0x31   :  { %1546 = vmatprep.subr.bf16.mxu1 %v1670_v47 }
  0x32   :  { %454 = vmatmul.mubr.bf16.gmra.mxu0 %v1626_v29  ;;  %550 = vmatmul.mubr.bf16.gmra.mxu1 %v1662_v32 }
  0x33   :  { %461 = vmatprep.mubr.bf16.mxu0 %v1627_v31  ;;  %557 = vmatprep.mubr.bf16.mxu1 %v1663_v33 }
  0x34   :  { %1547 = vmatpush3.bf16.msra.mxu1 %v1670_v47 }
  0x35   :  { %1548 = vmatprep.subr.bf16.mxu1 %v1671_v50 }
  0x38   :  { %1549 = vmatpush3.bf16.msra.mxu1 %v1671_v50 }
  0x39   :  { %1550 = vmatprep.subr.bf16.mxu1 %v1672_v51 }
  0x3a   :  { %462 = vmatmul.mubr.bf16.gmra.mxu0 %v1629_v34  ;;  %558 = vmatmul.mubr.bf16.gmra.mxu1 %v1665_v36 }
  0x3b   :  { %469 = vmatprep.mubr.bf16.mxu0 %v1630_v35 }
  0x3c   :  { %1551 = vmatpush3.bf16.msra.mxu1 %v1672_v51 }
  0x3d   :  { %1552 = vmatprep.subr.bf16.mxu1 %v1673_v54 }
  0x40   :  { %1553 = vmatpush3.bf16.msra.mxu1 %v1673_v54 }
  0x42   :  { %470 = vmatmul.mubr.bf16.gmra.mxu0 %v1632_v37 }
  0x43   :  { %477 = vmatprep.mubr.bf16.mxu0 %v1633_v38 }
  0x4a   :  { %478 = vmatmul.mubr.bf16.gmra.mxu0 %v1635_v39 }
  0x4b   :  { %485 = vmatprep.mubr.bf16.mxu0 %v1636_v40 }
  0x52   :  { %486 = vmatmul.mubr.bf16.gmra.mxu0 %v1638_v41 }
  0x53   :  { %493 = vmatprep.mubr.bf16.mxu0 %v1639_v42 }
  0x5a   :  { %494 = vmatmul.mubr.bf16.gmra.mxu0 %v1641_v43 }
  0x5b   :  { %501 = vmatprep.mubr.bf16.mxu0 %v1642_v44 }
  0x62   :  { %502 = vmatmul.mubr.bf16.gmra.mxu0 %v1644_v45 }
  0x63   :  { %509 = vmatprep.mubr.bf16.mxu0 %v1645_v46 }
  0x6a   :  { %510 = vmatmul.mubr.bf16.gmra.mxu0 %v1647_v48 }
  0x6b   :  { %517 = vmatprep.mubr.bf16.mxu0 %v1651_v49 }
  0x72   :  { %518 = vmatmul.mubr.bf16.gmra.mxu0 %v1653_v52 }
  0x73   :  { %525 = vmatprep.mubr.bf16.mxu0 %v1657_v53 }
  0x7a   :  { %526 = vmatmul.mubr.bf16.gmra.mxu0 %v1659_v55 }
  0xe2   :  { %v1418_v56 = vpop.f32.mrf.mxu0  ;;  %v1490_v31 = vpop.f32.mrf.mxu1 }
  0xe4   :  { %v1419_v57 = vpop.f32.mrf.mxu0  ;;  %v1491_v37 = vpop.f32.mrf.mxu1 }
  0xe5   :  { %v1420_v60 = vadd.f32 %v1419_v57, %v1418_v56 }
  0xe6   :  { %v1421_v58 = vpop.f32.mrf.mxu0  ;;  %v1493_v40 = vpop.f32.mrf.mxu1 }
  0xe8   :  { %v1422_v59 = vpop.f32.mrf.mxu0  ;;  %v1494_v46 = vpop.f32.mrf.mxu1 }
  0xe9   :  { %v1423_v61 = vadd.f32 %v1422_v59, %v1421_v58 }
  0xea   :  { %v1424_v62 = vpop.f32.mrf.mxu0  ;;  %v1496_v49 = vpop.f32.mrf.mxu1 }
  0xeb   :  { %v665_v63 = vpack.c.bf16 %v1423_v61, %v1420_v60 }
  0xec   :  { %v1425_v0 = vpop.f32.mrf.mxu0  ;;  %v1497_v55 = vpop.f32.mrf.mxu1 }
  0xed   :  { %1554 = vmatprep.mubr.bf16.mxu1 %v665_v63  ;;  %v1426_v3 = vadd.f32 %v1425_v0, %v1424_v62 }
  0xee   :  { %v1427_v1 = vpop.f32.mrf.mxu0  ;;  %v1499_v58 = vpop.f32.mrf.mxu1 }
  0xf0   :  { %v1428_v2 = vpop.f32.mrf.mxu0  ;;  %v1500_v0 = vpop.f32.mrf.mxu1 }
  0xf1   :  { %v1429_v4 = vadd.f32 %v1428_v2, %v1427_v1 }
  0xf2   :  { %v1430_v5 = vpop.f32.mrf.mxu0 }
  0xf3   :  { %v666_v6 = vpack.c.bf16 %v1429_v4, %v1426_v3  ;;  %v1502_v3 = vpop.f32.mrf.mxu1 }
  0xf4   :  { %v1431_v7 = vpop.f32.mrf.mxu0 }
  0xf5   :  { %1555 = vmatmul.mubr.bf16.vlgmr.msra.gmra.mxu1 %v666_v6  ;;  %v1432_v10 = vadd.f32 %v1431_v7, %v1430_v5 }
  0xf6   :  { %v1433_v8 = vpop.f32.mrf.mxu0 }
  0xf8   :  { %v1434_v9 = vpop.f32.mrf.mxu0 }
  0xf9   :  { %v1435_v11 = vadd.f32 %v1434_v9, %v1433_v8  ;;  %v1503_v9 = vpop.f32.mrf.mxu1 }
  0xfa   :  { %v1436_v12 = vpop.f32.mrf.mxu0 }
  0xfb   :  { %v667_v13 = vpack.c.bf16 %v1435_v11, %v1432_v10 }
  0xfc   :  { %v1437_v14 = vpop.f32.mrf.mxu0 }
  0xfd   :  { %1558 = vmatprep.mubr.bf16.mxu1 %v667_v13  ;;  %v1438_v17 = vadd.f32 %v1437_v14, %v1436_v12  ;;  %v1505_v12 = vpop.f32.mrf.mxu1 }
  0xfe   :  { %v1439_v15 = vpop.f32.mrf.mxu0 }
 0x100   :  { %v1440_v16 = vpop.f32.mrf.mxu0 }
 0x101   :  { %v1441_v18 = vadd.f32 %v1440_v16, %v1439_v15 }
 0x102   :  { %v1442_v19 = vpop.f32.mrf.mxu0 }
 0x103   :  { %v668_v20 = vpack.c.bf16 %v1441_v18, %v1438_v17  ;;  %v1506_v18 = vpop.f32.mrf.mxu1 }
 0x104   :  { %v1443_v21 = vpop.f32.mrf.mxu0 }
 0x105   :  { %1559 = vmatmul.mubr.bf16.gmra.mxu1 %v668_v20  ;;  %v1444_v24 = vadd.f32 %v1443_v21, %v1442_v19  ;;  %v1492_v20 = vadd.f32 %v1491_v37, %v1490_v31  ;;  %v1495_v21 = vadd.f32 %v1494_v46, %v1493_v40 }
 0x106   :  { %v1445_v22 = vpop.f32.mrf.mxu0 }
 0x108   :  { %v1446_v23 = vpop.f32.mrf.mxu0 }
 0x109   :  { %v1447_v25 = vadd.f32 %v1446_v23, %v1445_v22  ;;  %v1508_v23 = vpop.f32.mrf.mxu1 }
 0x10a   :  { %v1448_v26 = vpop.f32.mrf.mxu0 }
 0x10b   :  { %v669_v27 = vpack.c.bf16 %v1447_v25, %v1444_v24 }
 0x10c   :  { %v1449_v28 = vpop.f32.mrf.mxu0 }
 0x10d   :  { %1562 = vmatprep.mubr.bf16.mxu1 %v669_v27  ;;  %v1450_v32 = vadd.f32 %v1449_v28, %v1448_v26  ;;  %v677_v27 = vpack.c.bf16 %v1495_v21, %v1492_v20  ;;  %v1509_v28 = vpop.f32.mrf.mxu1 }
 0x10e   :  { %v1451_v29 = vpop.f32.mrf.mxu0  ;;  %v1510_v31 = vadd.f32 %v1509_v28, %v1508_v23 }
 0x110   :  { %v1452_v30 = vpop.f32.mrf.mxu0 }
 0x111   :  { %v1453_v33 = vadd.f32 %v1452_v30, %v1451_v29  ;;  %v1498_v29 = vadd.f32 %v1497_v55, %v1496_v49  ;;  %v1501_v30 = vadd.f32 %v1500_v0, %v1499_v58 }
 0x112   :  { %v1454_v34 = vpop.f32.mrf.mxu0 }
 0x113   :  { %v670_v35 = vpack.c.bf16 %v1453_v33, %v1450_v32  ;;  %v1504_v32 = vadd.f32 %v1503_v9, %v1502_v3  ;;  %v1507_v33 = vadd.f32 %v1506_v18, %v1505_v12 }
 0x114   :  { %v1455_v36 = vpop.f32.mrf.mxu0 }
 0x115   :  { %1563 = vmatmul.mubr.bf16.gmra.mxu1 %v670_v35  ;;  %v1456_v41 = vadd.f32 %v1455_v36, %v1454_v34  ;;  %v1511_v34 = vpop.f32.mrf.mxu1  ;;  %v678_v35 = vpack.c.bf16 %v1501_v30, %v1498_v29  ;;  %v679_v36 = vpack.c.bf16 %v1507_v33, %v1504_v32 }
 0x116   :  { %v1457_v38 = vpop.f32.mrf.mxu0 }
 0x118   :  { %v1458_v39 = vpop.f32.mrf.mxu0 }
 0x119   :  { %v1459_v42 = vadd.f32 %v1458_v39, %v1457_v38  ;;  %v1512_v38 = vpop.f32.mrf.mxu1 }
 0x11a   :  { %v1460_v43 = vpop.f32.mrf.mxu0  ;;  %v1513_v37 = vadd.f32 %v1512_v38, %v1511_v34 }
 0x11b   :  { %v671_v44 = vpack.c.bf16 %v1459_v42, %v1456_v41 }
 0x11c   :  { %v1461_v45 = vpop.f32.mrf.mxu0  ;;  %v680_v39 = vpack.c.bf16 %v1513_v37, %v1510_v31 }
 0x11d   :  { %1566 = vmatprep.mubr.bf16.mxu1 %v671_v44  ;;  %v1462_v50 = vadd.f32 %v1461_v45, %v1460_v43 }
 0x11e   :  { %v1463_v47 = vpop.f32.mrf.mxu0 }
 0x120   :  { %v1464_v48 = vpop.f32.mrf.mxu0 }
 0x121   :  { %v1465_v51 = vadd.f32 %v1464_v48, %v1463_v47 }
 0x122   :  { %v1466_v52 = vpop.f32.mrf.mxu0 }
 0x123   :  { %v672_v53 = vpack.c.bf16 %v1465_v51, %v1462_v50 }
 0x124   :  { %v1467_v54 = vpop.f32.mrf.mxu0 }
 0x125   :  { %1567 = vmatmul.mubr.bf16.gmra.mxu1 %v672_v53  ;;  %v1468_v59 = vadd.f32 %v1467_v54, %v1466_v52 }
 0x126   :  { %v1469_v56 = vpop.f32.mrf.mxu0 }
 0x128   :  { %v1470_v57 = vpop.f32.mrf.mxu0 }
 0x129   :  { %v1471_v60 = vadd.f32 %v1470_v57, %v1469_v56 }
 0x12a   :  { %v1472_v61 = vpop.f32.mrf.mxu0 }
 0x12b   :  { %v673_v62 = vpack.c.bf16 %v1471_v60, %v1468_v59 }
 0x12c   :  { %v1473_v63 = vpop.f32.mrf.mxu0 }
 0x12d   :  { %1570 = vmatprep.mubr.bf16.mxu1 %v673_v62  ;;  %v1474_v4 = vadd.f32 %v1473_v63, %v1472_v61 }
 0x12e   :  { %v1475_v1 = vpop.f32.mrf.mxu0 }
 0x130   :  { %v1476_v2 = vpop.f32.mrf.mxu0 }
 0x131   :  { %v1477_v5 = vadd.f32 %v1476_v2, %v1475_v1 }
 0x132   :  { %v1478_v6 = vpop.f32.mrf.mxu0 }
 0x133   :  { %v674_v7 = vpack.c.bf16 %v1477_v5, %v1474_v4 }
 0x134   :  { %v1479_v8 = vpop.f32.mrf.mxu0 }
 0x135   :  { %1571 = vmatmul.mubr.bf16.gmra.mxu1 %v674_v7  ;;  %v1480_v13 = vadd.f32 %v1479_v8, %v1478_v6 }
 0x136   :  { %v1481_v10 = vpop.f32.mrf.mxu0 }
 0x138   :  { %v1482_v11 = vpop.f32.mrf.mxu0 }
 0x139   :  { %v1483_v14 = vadd.f32 %v1482_v11, %v1481_v10 }
 0x13a   :  { %v1484_v15 = vpop.f32.mrf.mxu0 }
 0x13b   :  { %v675_v16 = vpack.c.bf16 %v1483_v14, %v1480_v13 }
 0x13c   :  { %v1485_v17 = vpop.f32.mrf.mxu0 }
 0x13d   :  { %1574 = vmatprep.mubr.bf16.mxu1 %v675_v16  ;;  %v1486_v24 = vadd.f32 %v1485_v17, %v1484_v15 }
 0x13e   :  { %v1487_v19 = vpop.f32.mrf.mxu0 }
 0x140   :  { %v1488_v22 = vpop.f32.mrf.mxu0 }
 0x141   :  { %v1489_v25 = vadd.f32 %v1488_v22, %v1487_v19 }
 0x143   :  { %v676_v26 = vpack.c.bf16 %v1489_v25, %v1486_v24 }
 0x145   :  { %1575 = vmatmul.mubr.bf16.gmra.mxu1 %v676_v26 }
 0x146   :  { %1578 = vmatprep.mubr.bf16.mxu1 %v677_v27 }
 0x14d   :  { %1579 = vmatmul.mubr.bf16.gmra.mxu1 %v678_v35 }
 0x14e   :  { %1582 = vmatprep.mubr.bf16.mxu1 %v679_v36 }
 0x155   :  { %1583 = vmatmul.mubr.bf16.gmra.mxu1 %v680_v39 }
 0x1b5   :  { %v1556_v40 = vpop.f32.mrf.mxu1 }
 0x1b6   :  { %v1105_v56 = vmul.f32 %v1556_v40, %v1556_v40 }
 0x1b7   :  { %v779_v41 = vpop.f32.mrf.mxu1 }
 0x1b8   :  { %v1103_v53 = vmul.f32 %v779_v41, %v779_v41 }
 0x1b9   :  { %v1557_v42 = vpop.f32.mrf.mxu1 }
 0x1ba   :  { %v1315_v43 = vpack.c.bf16 %v1557_v42, %v1556_v40  ;;  %v1106_v61 = vmul.f32 %v1557_v42, %v1557_v42 }
 0x1bb   :  { %v782_v44 = vpop.f32.mrf.mxu1 }
 0x1bc   :  { %1387 = vst [vmem:[%s1921_s3 + $0x8] sm:$0xff] %v1315_v43   ;;  %v1310_v45 = vpack.c.bf16 %v782_v44, %v779_v41  ;;  %v1104_v52 = vmul.f32 %v782_v44, %v782_v44  ;;  %v1066_v54 = vadd.f32 %v782_v44, %v779_v41 }
 0x1be   :  { %1311 = vst [vmem:[%s1921_s3] sm:$0xff] %v1310_v45   ;;  %v1135_v55 = vadd.f32 %v1104_v52, %v1103_v53  ;;  %v1067_v57 = vadd.f32 %v1556_v40, %v1066_v54 }
 0x1c0   :  { %v1136_v59 = vadd.f32 %v1135_v55, %v1105_v56  ;;  %v1068_v62 = vadd.f32 %v1557_v42, %v1067_v57 }
 0x1c2   :  { %v1137_v2 = vadd.f32 %v1136_v59, %v1106_v61 }
 0x1c5   :  { %v1560_v46 = vpop.f32.mrf.mxu1 }
 0x1c6   :  { %v1109_v10 = vmul.f32 %v1560_v46, %v1560_v46 }
 0x1c7   :  { %v795_v47 = vpop.f32.mrf.mxu1 }
 0x1c8   :  { %v1107_v63 = vmul.f32 %v795_v47, %v795_v47  ;;  %v1069_v1 = vadd.f32 %v1068_v62, %v795_v47 }
 0x1c9   :  { %v1561_v48 = vpop.f32.mrf.mxu1 }
 0x1ca   :  { %v1325_v49 = vpack.c.bf16 %v1561_v48, %v1560_v46  ;;  %v1138_v6 = vadd.f32 %v1137_v2, %v1107_v63  ;;  %v1110_v13 = vmul.f32 %v1561_v48, %v1561_v48 }
 0x1cb   :  { %v798_v50 = vpop.f32.mrf.mxu1 }
 0x1cc   :  { %1389 = vst [vmem:[%s1921_s3 + $0x18] sm:$0xff] %v1325_v49   ;;  %v1320_v51 = vpack.c.bf16 %v798_v50, %v795_v47  ;;  %v1108_v3 = vmul.f32 %v798_v50, %v798_v50  ;;  %v1070_v7 = vadd.f32 %v1069_v1, %v798_v50 }
 0x1ce   :  { %1388 = vst [vmem:[%s1921_s3 + $0x10] sm:$0xff] %v1320_v51   ;;  %v1139_v9 = vadd.f32 %v1138_v6, %v1108_v3  ;;  %v1071_v11 = vadd.f32 %v1560_v46, %v1070_v7 }
 0x1d0   :  { %v1140_v12 = vadd.f32 %v1139_v9, %v1109_v10  ;;  %v1072_v14 = vadd.f32 %v1561_v48, %v1071_v11 }
 0x1d2   :  { %v1141_v18 = vadd.f32 %v1140_v12, %v1110_v13 }
 0x1d5   :  { %v1564_v58 = vpop.f32.mrf.mxu1 }
 0x1d6   :  { %v1113_v27 = vmul.f32 %v1564_v58, %v1564_v58 }
 0x1d7   :  { %v811_v60 = vpop.f32.mrf.mxu1 }
 0x1d8   :  { %v1111_v15 = vmul.f32 %v811_v60, %v811_v60  ;;  %v1073_v17 = vadd.f32 %v1072_v14, %v811_v60 }
 0x1d9   :  { %v1565_v0 = vpop.f32.mrf.mxu1 }
 0x1da   :  { %v1335_v4 = vpack.c.bf16 %v1565_v0, %v1564_v58  ;;  %v1142_v21 = vadd.f32 %v1141_v18, %v1111_v15  ;;  %v1114_v32 = vmul.f32 %v1565_v0, %v1565_v0 }
 0x1db   :  { %v814_v5 = vpop.f32.mrf.mxu1 }
 0x1dc   :  { %1391 = vst [vmem:[%s1921_s3 + $0x28] sm:$0xff] %v1335_v4   ;;  %v1330_v8 = vpack.c.bf16 %v814_v5, %v811_v60  ;;  %v1112_v19 = vmul.f32 %v814_v5, %v814_v5  ;;  %v1074_v22 = vadd.f32 %v1073_v17, %v814_v5 }
 0x1de   :  { %1390 = vst [vmem:[%s1921_s3 + $0x20] sm:$0xff] %v1330_v8   ;;  %v1143_v24 = vadd.f32 %v1142_v21, %v1112_v19  ;;  %v1075_v28 = vadd.f32 %v1564_v58, %v1074_v22 }
 0x1e0   :  { %v1144_v30 = vadd.f32 %v1143_v24, %v1113_v27  ;;  %v1076_v33 = vadd.f32 %v1565_v0, %v1075_v28 }
 0x1e2   :  { %v1145_v36 = vadd.f32 %v1144_v30, %v1114_v32 }
 0x1e5   :  { %v1568_v16 = vpop.f32.mrf.mxu1 }
 0x1e6   :  { %v1117_v42 = vmul.f32 %v1568_v16, %v1568_v16 }
 0x1e7   :  { %v827_v20 = vpop.f32.mrf.mxu1 }
 0x1e8   :  { %v1115_v34 = vmul.f32 %v827_v20, %v827_v20  ;;  %v1077_v35 = vadd.f32 %v1076_v33, %v827_v20 }
 0x1e9   :  { %v1569_v23 = vpop.f32.mrf.mxu1 }
 0x1ea   :  { %v1345_v25 = vpack.c.bf16 %v1569_v23, %v1568_v16  ;;  %v1146_v31 = vadd.f32 %v1145_v36, %v1115_v34  ;;  %v1118_v48 = vmul.f32 %v1569_v23, %v1569_v23 }
 0x1eb   :  { %v830_v26 = vpop.f32.mrf.mxu1 }
 0x1ec   :  { %1393 = vst [vmem:[%s1921_s3 + $0x38] sm:$0xff] %v1345_v25   ;;  %v1340_v29 = vpack.c.bf16 %v830_v26, %v827_v20  ;;  %v1116_v38 = vmul.f32 %v830_v26, %v830_v26  ;;  %v1078_v37 = vadd.f32 %v1077_v35, %v830_v26 }
 0x1ee   :  { %1392 = vst [vmem:[%s1921_s3 + $0x30] sm:$0xff] %v1340_v29   ;;  %v1147_v40 = vadd.f32 %v1146_v31, %v1116_v38  ;;  %v1079_v43 = vadd.f32 %v1568_v16, %v1078_v37 }
 0x1f0   :  { %v1148_v45 = vadd.f32 %v1147_v40, %v1117_v42  ;;  %v1080_v49 = vadd.f32 %v1569_v23, %v1079_v43 }
 0x1f2   :  { %v1149_v53 = vadd.f32 %v1148_v45, %v1118_v48 }
 0x1f5   :  { %v1572_v39 = vpop.f32.mrf.mxu1 }
 0x1f6   :  { %v1121_v58 = vmul.f32 %v1572_v39, %v1572_v39 }
 0x1f7   :  { %v843_v41 = vpop.f32.mrf.mxu1 }
 0x1f8   :  { %v1119_v50 = vmul.f32 %v843_v41, %v843_v41  ;;  %v1081_v52 = vadd.f32 %v1080_v49, %v843_v41 }
 0x1f9   :  { %v1573_v44 = vpop.f32.mrf.mxu1 }
 0x1fa   :  { %v1355_v46 = vpack.c.bf16 %v1573_v44, %v1572_v39  ;;  %v1150_v55 = vadd.f32 %v1149_v53, %v1119_v50  ;;  %v1122_v63 = vmul.f32 %v1573_v44, %v1573_v44 }
 0x1fb   :  { %v846_v47 = vpop.f32.mrf.mxu1 }
 0x1fc   :  { %1395 = vst [vmem:[%s1921_s3 + $0x48] sm:$0xff] %v1355_v46   ;;  %v1350_v51 = vpack.c.bf16 %v846_v47, %v843_v41  ;;  %v1120_v54 = vmul.f32 %v846_v47, %v846_v47  ;;  %v1082_v56 = vadd.f32 %v1081_v52, %v846_v47 }
 0x1fe   :  { %1394 = vst [vmem:[%s1921_s3 + $0x40] sm:$0xff] %v1350_v51   ;;  %v1151_v57 = vadd.f32 %v1150_v55, %v1120_v54  ;;  %v1083_v59 = vadd.f32 %v1572_v39, %v1082_v56 }
 0x200   :  { %v1152_v61 = vadd.f32 %v1151_v57, %v1121_v58  ;;  %v1084_v0 = vadd.f32 %v1573_v44, %v1083_v59  ;;  %v1172_v57 = vlaneseq }
 0x202   :  { %v1153_v4 = vadd.f32 %v1152_v61, %v1122_v63 }
 0x205   :  { %v1576_v60 = vpop.f32.mrf.mxu1 }
 0x206   :  { %v1125_v12 = vmul.f32 %v1576_v60, %v1576_v60 }
 0x207   :  { %v859_v62 = vpop.f32.mrf.mxu1 }
 0x208   :  { %v1123_v1 = vmul.f32 %v859_v62, %v859_v62  ;;  %v1085_v3 = vadd.f32 %v1084_v0, %v859_v62 }
 0x209   :  { %v1577_v2 = vpop.f32.mrf.mxu1 }
 0x20a   :  { %v1365_v5 = vpack.c.bf16 %v1577_v2, %v1576_v60  ;;  %v1154_v7 = vadd.f32 %v1153_v4, %v1123_v1  ;;  %v1126_v16 = vmul.f32 %v1577_v2, %v1577_v2 }
 0x20b   :  { %v862_v6 = vpop.f32.mrf.mxu1 }
 0x20c   :  { %1397 = vst [vmem:[%s1921_s3 + $0x58] sm:$0xff] %v1365_v5   ;;  %v1360_v8 = vpack.c.bf16 %v862_v6, %v859_v62  ;;  %v1086_v9 = vadd.f32 %v1085_v3, %v862_v6  ;;  %v1124_v10 = vmul.f32 %v862_v6, %v862_v6  ;;  %v1173_v62 = vshrl.u32 %v1172_v57, 7 }
 0x20d   :  { %v1580_v11 = vpop.f32.mrf.mxu1 }
 0x20e   :  { %1396 = vst [vmem:[%s1921_s3 + $0x50] sm:$0xff] %v1360_v8   ;;  %v1087_v13 = vadd.f32 %v1576_v60, %v1086_v9  ;;  %v1155_v14 = vadd.f32 %v1154_v7, %v1124_v10  ;;  %v1129_v30 = vmul.f32 %v1580_v11, %v1580_v11  ;;  %vm1175_vm0 = vcmp.eq.s32.totalorder %v1173_v62, 1 }
 0x20f   :  { %v875_v15 = vpop.f32.mrf.mxu1  ;;  %vm1174_vm1 = vcmp.eq.s32.totalorder %v1173_v62, 0 }
 0x210   :  { %v1156_v17 = vadd.f32 %v1155_v14, %v1125_v12  ;;  %v1088_v18 = vadd.f32 %v1577_v2, %v1087_v13  ;;  %v1127_v21 = vmul.f32 %v875_v15, %v875_v15 }
 0x211   :  { %v1581_v19 = vpop.f32.mrf.mxu1 }
 0x212   :  { %v1089_v20 = vadd.f32 %v1088_v18, %v875_v15  ;;  %v1157_v22 = vadd.f32 %v1156_v17, %v1126_v16  ;;  %v1375_v23 = vpack.c.bf16 %v1581_v19, %v1580_v11  ;;  %v1130_v35 = vmul.f32 %v1581_v19, %v1581_v19 }
 0x213   :  { %v878_v24 = vpop.f32.mrf.mxu1 }
 0x214   :  { %v1158_v25 = vadd.f32 %v1157_v22, %v1127_v21  ;;  %1399 = vst [vmem:[%s1921_s3 + $0x68] sm:$0xff] %v1375_v23   ;;  %v1370_v26 = vpack.c.bf16 %v878_v24, %v875_v15  ;;  %v1090_v27 = vadd.f32 %v1089_v20, %v878_v24  ;;  %v1128_v28 = vmul.f32 %v878_v24, %v878_v24 }
 0x215   :  { %v1584_v29 = vpop.f32.mrf.mxu1 }
 0x216   :  { %1398 = vst [vmem:[%s1921_s3 + $0x60] sm:$0xff] %v1370_v26   ;;  %v1091_v32 = vadd.f32 %v1580_v11, %v1090_v27  ;;  %v1159_v33 = vadd.f32 %v1158_v25, %v1128_v28  ;;  %v1133_v47 = vmul.f32 %v1584_v29, %v1584_v29 }
 0x217   :  { %v891_v34 = vpop.f32.mrf.mxu1 }
 0x218   :  { %v1160_v36 = vadd.f32 %v1159_v33, %v1129_v30  ;;  %v1092_v38 = vadd.f32 %v1581_v19, %v1091_v32  ;;  %v1131_v39 = vmul.f32 %v891_v34, %v891_v34 }
 0x219   :  { %v1585_v31 = vpop.f32.mrf.mxu1 }
 0x21a   :  { %v1093_v37 = vadd.f32 %v1092_v38, %v891_v34  ;;  %v1161_v40 = vadd.f32 %v1160_v36, %v1130_v35  ;;  %v1385_v41 = vpack.c.bf16 %v1585_v31, %v1584_v29  ;;  %v1134_v50 = vmul.f32 %v1585_v31, %v1585_v31 }
 0x21b   :  { %v894_v42 = vpop.f32.mrf.mxu1 }
 0x21c   :  { %v1162_v43 = vadd.f32 %v1161_v40, %v1131_v39  ;;  %1401 = vst [vmem:[%s1921_s3 + $0x78] sm:$0xff] %v1385_v41   ;;  %v1380_v44 = vpack.c.bf16 %v894_v42, %v891_v34  ;;  %v1094_v45 = vadd.f32 %v1093_v37, %v894_v42  ;;  %v1132_v46 = vmul.f32 %v894_v42, %v894_v42 }
 0x21e   :  { %1400 = vst [vmem:[%s1921_s3 + $0x70] sm:$0xff] %v1380_v44   ;;  %v1095_v48 = vadd.f32 %v1584_v29, %v1094_v45  ;;  %v1163_v49 = vadd.f32 %v1162_v43, %v1132_v46 }
 0x220   :  { %v1096_v51 = vadd.f32 %v1585_v31, %v1095_v48  ;;  %v1164_v52 = vadd.f32 %v1163_v49, %v1133_v47 }
 0x222   :  { %v1097_v53 = vrot.slane %v1096_v51, 4  ;;  %v1165_v54 = vadd.f32 %v1164_v52, %v1134_v50 }
 0x224   :  { %v1098_v55 = vadd.f32 %v1097_v53, %v1096_v51  ;;  %v1166_v56 = vrot.slane %v1165_v54, 4 }
 0x226   :  { %v1099_v58 = vrot.slane %v1098_v55, 2  ;;  %v1167_v59 = vadd.f32 %v1166_v56, %v1165_v54 }
 0x228   :  { %v1100_v60 = vadd.f32 %v1099_v58, %v1098_v55  ;;  %v1168_v61 = vrot.slane %v1167_v59, 2 }
 0x22a   :  { %v1169_v63 = vadd.f32 %v1168_v61, %v1167_v59  ;;  %v1101_v0 = vrot.slane %v1100_v60, 1 }
 0x22c   :  { %v1170_v1 = vrot.slane %v1169_v63, 1  ;;  %v1102_v3 = vadd.f32 %v1101_v0, %v1100_v60 }
 0x22e   :  { %v1171_v2 = vadd.f32 %v1170_v1, %v1169_v63 }
 0x230   :  { %v1176_v4 = vsel %vm1175_vm0, %v1171_v2, 0.0 }
 0x231   :  { %v1177_v5 = vsel %vm1174_vm1, %v1102_v3, %v1176_v4 }
 0x232   :  { %1178 = vst [vmem:[%s1922_s4] sm:$0xff] %v1177_v5 }

// kernel: _lambda_.5
= control target key start
LH: loop header
LB: loop body
LE: loop exit
PB: predicated region body
PF: predicated region fallthrough
CT: control target
= control target key end

     0   :  { %s2119_s1 = inlined_call_operand.vmem [shape: bf16[256,128], index: 1, kind: input, shape index: {}]   ;;  %s2120_s2 = inlined_call_operand.vmem [shape: f32[1,128], index: 2, kind: input, shape index: {}]   ;;  %s2121_s3 = inlined_call_operand.vmem [shape: f32[1,128], index: 3, kind: input, shape index: {}]   ;;  %s2122_s0 = inlined_call_operand.vmem [shape: bf16[256,256], index: 0, kind: input, shape index: {}]   ;;  %s2123_s4 = inlined_call_operand.vmem [shape: bf16[128,128], index: 4, kind: input, shape index: {}]   ;;  %s2124_s5 = inlined_call_operand.vmem [shape: bf16[256,128], index: 5, kind: output, shape index: {0}]   ;;  %s2125_s6 = inlined_call_operand.vmem [shape: f32[8,128], index: 6, kind: output, shape index: {1}]  }
   0x1   :  { %v1519_v0 = vld [vmem:[%s2119_s1 + $0x78] sm:$0xff]   ;;  %v1832_v1 = vld [vmem:[%s2120_s2] ss:$0 sm:$0xff]  ;;  %v1518_v5 = vld [vmem:[%s2119_s1 + $0x70] sm:$0xff]  }
   0x2   :  { %v1423_v2 = vunpack.c.l.bf16 %v1519_v0  ;;  %v1424_v3 = vunpack.c.h.bf16 %v1519_v0  ;;  %v1511_v4 = vld [vmem:[%s2119_s1 + $0x38] sm:$0xff]   ;;  %v1510_v6 = vld [vmem:[%s2119_s1 + $0x30] sm:$0xff]   ;;  %v1846_v7 = vld [vmem:[%s2121_s3] ss:$0 sm:$0xff]  ;;  %v1419_v10 = vunpack.c.l.bf16 %v1518_v5  ;;  %v1420_v11 = vunpack.c.h.bf16 %v1518_v5 }
   0x3   :  { %v1391_v8 = vunpack.c.l.bf16 %v1511_v4  ;;  %v1392_v9 = vunpack.c.h.bf16 %v1511_v4  ;;  %v1387_v14 = vunpack.c.l.bf16 %v1510_v6  ;;  %v1388_v15 = vunpack.c.h.bf16 %v1510_v6  ;;  %v1517_v24 = vld [vmem:[%s2119_s1 + $0x68] sm:$0xff]   ;;  %v1516_v39 = vld [vmem:[%s2119_s1 + $0x60] sm:$0xff]  }
   0x4   :  { %v160_v12 = vmul.f32 %v1423_v2, %v1832_v1  ;;  %v161_v13 = vmul.f32 %v1424_v3, %v1832_v1  ;;  %v158_v18 = vmul.f32 %v1419_v10, %v1832_v1  ;;  %v159_v19 = vmul.f32 %v1420_v11, %v1832_v1  ;;  %v1509_v29 = vld [vmem:[%s2119_s1 + $0x28] sm:$0xff]   ;;  %v1508_v44 = vld [vmem:[%s2119_s1 + $0x20] sm:$0xff]   ;;  %v1515_v2 = vld [vmem:[%s2119_s1 + $0x58] sm:$0xff]  }
   0x5   :  { %v144_v16 = vmul.f32 %v1391_v8, %v1832_v1  ;;  %v145_v17 = vmul.f32 %v1392_v9, %v1832_v1  ;;  %v142_v22 = vmul.f32 %v1387_v14, %v1832_v1  ;;  %v143_v23 = vmul.f32 %v1388_v15, %v1832_v1  ;;  %v1737_v34 = vld [vmem:[%s2122_s0 + $0x4] ss:$8 sps:$4 sm:$0xff]  }
   0x6   :  { %v199_v20 = vadd.f32 %v1846_v7, %v160_v12  ;;  %v200_v21 = vadd.f32 %v1846_v7, %v161_v13  ;;  %v197_v27 = vadd.f32 %v1846_v7, %v158_v18  ;;  %v198_v28 = vadd.f32 %v1846_v7, %v159_v19  ;;  %505 = vmatprep.mubr.bf16.mxu0 %v1737_v34  ;;  %v1507_v12 = vld [vmem:[%s2119_s1 + $0x18] sm:$0xff]  }
   0x7   :  { %v183_v25 = vadd.f32 %v1846_v7, %v144_v16  ;;  %v184_v26 = vadd.f32 %v1846_v7, %v145_v17  ;;  %v181_v32 = vadd.f32 %v1846_v7, %v142_v22  ;;  %v182_v33 = vadd.f32 %v1846_v7, %v143_v23  ;;  %v1514_v17 = vld [vmem:[%s2119_s1 + $0x50] sm:$0xff]  }
   0x8   :  { %v231_v30 = vmax.f32 %v199_v20, 0.0  ;;  %v232_v31 = vmax.f32 %v200_v21, 0.0  ;;  %v229_v37 = vmax.f32 %v197_v27, 0.0  ;;  %v230_v38 = vmax.f32 %v198_v28, 0.0 }
   0x9   :  { %v215_v35 = vmax.f32 %v183_v25, 0.0  ;;  %v216_v36 = vmax.f32 %v184_v26, 0.0  ;;  %v213_v41 = vmax.f32 %v181_v32, 0.0  ;;  %v214_v42 = vmax.f32 %v182_v33, 0.0  ;;  %v1506_v26 = vld [vmem:[%s2119_s1 + $0x10] sm:$0xff]  }
   0xa   :  { %v248_v40 = vpack.c.bf16 %v232_v31, %v231_v30  ;;  %v1415_v43 = vunpack.c.l.bf16 %v1517_v24  ;;  %v247_v46 = vpack.c.bf16 %v230_v38, %v229_v37  ;;  %v1416_v47 = vunpack.c.h.bf16 %v1517_v24 }
   0xb   :  { %v240_v45 = vpack.c.bf16 %v216_v36, %v215_v35  ;;  %v1383_v48 = vunpack.c.l.bf16 %v1509_v29  ;;  %v239_v49 = vpack.c.bf16 %v214_v42, %v213_v41  ;;  %v1384_v51 = vunpack.c.h.bf16 %v1509_v29  ;;  %v1767_v35 = vld [vmem:[%s2122_s0 + $0xc4] ss:$8 sps:$4 sm:$0xff]  }
   0xc   :  { %1535 = vmatprep.subr.bf16.mxu0 %v248_v40  ;;  %v156_v50 = vmul.f32 %v1415_v43, %v1832_v1  ;;  %v1411_v52 = vunpack.c.l.bf16 %v1516_v39  ;;  %1719 = vmatprep.subr.bf16.mxu1 %v248_v40  ;;  %v157_v53 = vmul.f32 %v1416_v47, %v1832_v1  ;;  %v1412_v55 = vunpack.c.h.bf16 %v1516_v39  ;;  %v1513_v40 = vld [vmem:[%s2119_s1 + $0x48] sm:$0xff]  }
   0xd   :  { %1536 = vmatpush3.bf16.msra.mxu0 %v240_v45  ;;  %v140_v54 = vmul.f32 %v1383_v48, %v1832_v1  ;;  %v1379_v56 = vunpack.c.l.bf16 %v1508_v44  ;;  %1727 = vmatpush3.bf16.msra.mxu1 %v240_v45  ;;  %v141_v58 = vmul.f32 %v1384_v51, %v1832_v1  ;;  %v1380_v60 = vunpack.c.h.bf16 %v1508_v44 }
   0xe   :  { %1537 = vmatprep.subr.bf16.mxu0 %v247_v46  ;;  %v195_v57 = vadd.f32 %v1846_v7, %v156_v50  ;;  %v154_v59 = vmul.f32 %v1411_v52, %v1832_v1  ;;  %1720 = vmatprep.subr.bf16.mxu1 %v247_v46  ;;  %v196_v61 = vadd.f32 %v1846_v7, %v157_v53  ;;  %v1407_v16 = vunpack.c.l.bf16 %v1515_v2  ;;  %v1505_v53 = vld [vmem:[%s2119_s1 + $0x8] sm:$0xff]  }
   0xf   :  { %v179_v62 = vadd.f32 %v1846_v7, %v140_v54  ;;  %v155_v63 = vmul.f32 %v1412_v55, %v1832_v1  ;;  %v138_v0 = vmul.f32 %v1379_v56, %v1832_v1  ;;  %v180_v4 = vadd.f32 %v1846_v7, %v141_v58  ;;  %601 = vmatprep.mubr.bf16.mxu1 %v1767_v35 }
  0x10   :  { %v227_v3 = vmax.f32 %v195_v57, 0.0  ;;  %v193_v5 = vadd.f32 %v1846_v7, %v154_v59  ;;  %v139_v6 = vmul.f32 %v1380_v60, %v1832_v1  ;;  %v228_v8 = vmax.f32 %v196_v61, 0.0 }
  0x11   :  { %1538 = vmatpush3.bf16.msra.mxu0 %v239_v49  ;;  %v211_v9 = vmax.f32 %v179_v62, 0.0  ;;  %v194_v10 = vadd.f32 %v1846_v7, %v155_v63  ;;  %v177_v11 = vadd.f32 %v1846_v7, %v138_v0  ;;  %1728 = vmatpush3.bf16.msra.mxu1 %v239_v49  ;;  %v212_v13 = vmax.f32 %v180_v4, 0.0  ;;  %v1512_v62 = vld [vmem:[%s2119_s1 + $0x40] sm:$0xff]  }
  0x12   :  { %v225_v14 = vmax.f32 %v193_v5, 0.0  ;;  %v178_v15 = vadd.f32 %v1846_v7, %v139_v6  ;;  %v246_v18 = vpack.c.bf16 %v228_v8, %v227_v3  ;;  %v1408_v21 = vunpack.c.h.bf16 %v1515_v2  ;;  %v1362_v4 = vld [vmem:[%s2119_s1] sm:$0xff]  }
  0x13   :  { %v226_v19 = vmax.f32 %v194_v10, 0.0  ;;  %v209_v20 = vmax.f32 %v177_v11, 0.0  ;;  %v238_v22 = vpack.c.bf16 %v212_v13, %v211_v9  ;;  %v152_v24 = vmul.f32 %v1407_v16, %v1832_v1 }
  0x14   :  { %v210_v23 = vmax.f32 %v178_v15, 0.0  ;;  %v1375_v25 = vunpack.c.l.bf16 %v1507_v12  ;;  %1539 = vmatprep.subr.bf16.mxu0 %v246_v18  ;;  %v153_v28 = vmul.f32 %v1408_v21, %v1832_v1  ;;  %v1376_v29 = vunpack.c.h.bf16 %v1507_v12  ;;  %1721 = vmatprep.subr.bf16.mxu1 %v246_v18 }
  0x15   :  { %v245_v27 = vpack.c.bf16 %v226_v19, %v225_v14  ;;  %v1403_v30 = vunpack.c.l.bf16 %v1514_v17  ;;  %1540 = vmatpush3.bf16.msra.mxu0 %v238_v22  ;;  %v191_v32 = vadd.f32 %v1846_v7, %v152_v24  ;;  %v1404_v34 = vunpack.c.h.bf16 %v1514_v17  ;;  %1729 = vmatpush3.bf16.msra.mxu1 %v238_v22 }
  0x16   :  { %v237_v31 = vpack.c.bf16 %v210_v23, %v209_v20  ;;  %v136_v33 = vmul.f32 %v1375_v25, %v1832_v1  ;;  %v192_v36 = vadd.f32 %v1846_v7, %v153_v28  ;;  %v137_v37 = vmul.f32 %v1376_v29, %v1832_v1 }
  0x17   :  { %1541 = vmatprep.subr.bf16.mxu0 %v245_v27  ;;  %v150_v38 = vmul.f32 %v1403_v30, %v1832_v1  ;;  %v1371_v39 = vunpack.c.l.bf16 %v1506_v26  ;;  %1722 = vmatprep.subr.bf16.mxu1 %v245_v27  ;;  %v223_v41 = vmax.f32 %v191_v32, 0.0  ;;  %v151_v43 = vmul.f32 %v1404_v34, %v1832_v1 }
  0x18   :  { %v175_v42 = vadd.f32 %v1846_v7, %v136_v33  ;;  %v1372_v44 = vunpack.c.h.bf16 %v1506_v26  ;;  %v224_v45 = vmax.f32 %v192_v36, 0.0  ;;  %v176_v46 = vadd.f32 %v1846_v7, %v137_v37 }
  0x19   :  { %v189_v47 = vadd.f32 %v1846_v7, %v150_v38  ;;  %v134_v48 = vmul.f32 %v1371_v39, %v1832_v1  ;;  %1542 = vmatpush3.bf16.msra.mxu0 %v237_v31  ;;  %v190_v50 = vadd.f32 %v1846_v7, %v151_v43  ;;  %v1399_v52 = vunpack.c.l.bf16 %v1513_v40  ;;  %1730 = vmatpush3.bf16.msra.mxu1 %v237_v31  ;;  %v1784_v43 = vld [vmem:[%s2123_s4 + $0x30] sm:$0xff]  }
  0x1a   :  { %v207_v49 = vmax.f32 %v175_v42, 0.0  ;;  %v135_v51 = vmul.f32 %v1372_v44, %v1832_v1  ;;  %v244_v54 = vpack.c.bf16 %v224_v45, %v223_v41  ;;  %v208_v55 = vmax.f32 %v176_v46, 0.0  ;;  %v1738_v41 = vld [vmem:[%s2122_s0 + $0x14] ss:$8 sps:$4 sm:$0xff]   ;;  %v1785_v44 = vld [vmem:[%s2123_s4 + $0x28] sm:$0xff]  }
  0x1b   :  { %v221_v56 = vmax.f32 %v189_v47, 0.0  ;;  %v173_v57 = vadd.f32 %v1846_v7, %v134_v48  ;;  %v222_v58 = vmax.f32 %v190_v50, 0.0  ;;  %v1400_v60 = vunpack.c.h.bf16 %v1513_v40  ;;  %v1735_v40 = vld [vmem:[%s2122_s0] ss:$8 sps:$4 sm:$0xff]   ;;  %v1771_v42 = vld [vmem:[%s2122_s0 + $0xd4] ss:$8 sps:$4 sm:$0xff]  }
  0x1c   :  { %v174_v59 = vadd.f32 %v1846_v7, %v135_v51  ;;  %v148_v61 = vmul.f32 %v1399_v52, %v1832_v1  ;;  %1543 = vmatprep.subr.bf16.mxu0 %v244_v54  ;;  %v236_v63 = vpack.c.bf16 %v208_v55, %v207_v49  ;;  %v1367_v2 = vunpack.c.l.bf16 %v1505_v53  ;;  %1723 = vmatprep.subr.bf16.mxu1 %v244_v54  ;;  %v1740_v45 = vld [vmem:[%s2122_s0 + $0x10] ss:$8 sps:$4 sm:$0xff]   ;;  %v1741_v47 = vld [vmem:[%s2122_s0 + $0x24] ss:$8 sps:$4 sm:$0xff]   ;;  %v1743_v50 = vld [vmem:[%s2122_s0 + $0x20] ss:$8 sps:$4 sm:$0xff]  }
  0x1d   :  { %v205_v0 = vmax.f32 %v173_v57, 0.0  ;;  %v1368_v3 = vunpack.c.h.bf16 %v1505_v53  ;;  %v243_v5 = vpack.c.bf16 %v222_v58, %v221_v56  ;;  %v149_v8 = vmul.f32 %v1400_v60, %v1832_v1  ;;  %v1773_v46 = vld [vmem:[%s2122_s0 + $0xd0] ss:$8 sps:$4 sm:$0xff]   ;;  %v1777_v48 = vld [vmem:[%s2122_s0 + $0xe4] ss:$8 sps:$4 sm:$0xff]  }
  0x1e   :  { %v206_v6 = vmax.f32 %v174_v59, 0.0  ;;  %v187_v9 = vadd.f32 %v1846_v7, %v148_v61  ;;  %1544 = vmatpush3.bf16.msra.mxu0 %v236_v63  ;;  %v132_v10 = vmul.f32 %v1367_v2, %v1832_v1  ;;  %v1395_v12 = vunpack.c.l.bf16 %v1512_v62  ;;  %1731 = vmatpush3.bf16.msra.mxu1 %v236_v63  ;;  %v1786_v49 = vld [vmem:[%s2123_s4 + $0x20] sm:$0xff]   ;;  %v1744_v52 = vld [vmem:[%s2122_s0 + $0x34] ss:$8 sps:$4 sm:$0xff]   ;;  %v1746_v54 = vld [vmem:[%s2122_s0 + $0x30] ss:$8 sps:$4 sm:$0xff]  }
  0x1f   :  { %v133_v11 = vmul.f32 %v1368_v3, %v1832_v1  ;;  %v1396_v13 = vunpack.c.h.bf16 %v1512_v62  ;;  %1545 = vmatprep.subr.bf16.mxu0 %v243_v5  ;;  %v188_v15 = vadd.f32 %v1846_v7, %v149_v8  ;;  %v1363_v17 = vunpack.c.l.bf16 %v1362_v4  ;;  %1724 = vmatprep.subr.bf16.mxu1 %v243_v5  ;;  %v1779_v51 = vld [vmem:[%s2122_s0 + $0xe0] ss:$8 sps:$4 sm:$0xff]   ;;  %v1780_v53 = vld [vmem:[%s2122_s0 + $0xf4] ss:$8 sps:$4 sm:$0xff]   ;;  %v1782_v55 = vld [vmem:[%s2122_s0 + $0xf0] ss:$8 sps:$4 sm:$0xff]  }
  0x20   :  { %v235_v14 = vpack.c.bf16 %v206_v6, %v205_v0  ;;  %v219_v16 = vmax.f32 %v187_v9, 0.0  ;;  %v171_v18 = vadd.f32 %v1846_v7, %v132_v10  ;;  %v146_v20 = vmul.f32 %v1395_v12, %v1832_v1  ;;  %v1747_v56 = vld [vmem:[%s2122_s0 + $0x44] ss:$8 sps:$4 sm:$0xff]   ;;  %v1749_v57 = vld [vmem:[%s2122_s0 + $0x40] ss:$8 sps:$4 sm:$0xff]   ;;  %v1788_v8 = vld [vmem:[%s2123_s4 + $0x10] sm:$0xff]  }
  0x21   :  { %v172_v19 = vadd.f32 %v1846_v7, %v133_v11  ;;  %v147_v21 = vmul.f32 %v1396_v13, %v1832_v1  ;;  %v220_v22 = vmax.f32 %v188_v15, 0.0  ;;  %v1364_v23 = vunpack.c.h.bf16 %v1362_v4  ;;  %v1750_v58 = vld [vmem:[%s2122_s0 + $0x54] ss:$8 sps:$4 sm:$0xff]   ;;  %v1752_v59 = vld [vmem:[%s2122_s0 + $0x50] ss:$8 sps:$4 sm:$0xff]   ;;  %v1789_v9 = vld [vmem:[%s2123_s4 + $0x8] sm:$0xff]  }
  0x22   :  { %v130_v24 = vmul.f32 %v1363_v17, %v1832_v1  ;;  %1546 = vmatpush3.bf16.msra.mxu0 %v235_v14  ;;  %v203_v25 = vmax.f32 %v171_v18, 0.0  ;;  %v185_v27 = vadd.f32 %v1846_v7, %v146_v20  ;;  %1732 = vmatpush3.bf16.msra.mxu1 %v235_v14  ;;  %v1753_v60 = vld [vmem:[%s2122_s0 + $0x64] ss:$8 sps:$4 sm:$0xff]   ;;  %v1755_v61 = vld [vmem:[%s2122_s0 + $0x60] ss:$8 sps:$4 sm:$0xff]   ;;  %v1787_v4 = vld [vmem:[%s2123_s4 + $0x18] sm:$0xff]  }
  0x23   :  { %v204_v26 = vmax.f32 %v172_v19, 0.0  ;;  %v186_v28 = vadd.f32 %v1846_v7, %v147_v21  ;;  %v242_v29 = vpack.c.bf16 %v220_v22, %v219_v16  ;;  %v131_v30 = vmul.f32 %v1364_v23, %v1832_v1  ;;  %v1783_v1 = vld [vmem:[%s2123_s4 + $0x38] sm:$0xff]   ;;  %v1759_v0 = vld [vmem:[%s2122_s0 + $0x84] ss:$8 sps:$4 sm:$0xff]   ;;  %v1761_v2 = vld [vmem:[%s2122_s0 + $0x80] ss:$8 sps:$4 sm:$0xff]  }
  0x24   :  { %v169_v31 = vadd.f32 %v1846_v7, %v130_v24  ;;  %v217_v33 = vmax.f32 %v185_v27, 0.0  ;;  %v1756_v62 = vld [vmem:[%s2122_s0 + $0x74] ss:$8 sps:$4 sm:$0xff]   ;;  %v1758_v63 = vld [vmem:[%s2122_s0 + $0x70] ss:$8 sps:$4 sm:$0xff]   ;;  %v1790_v12 = vld [vmem:[%s2123_s4] sm:$0xff]  }
  0x25   :  { %v234_v32 = vpack.c.bf16 %v204_v26, %v203_v25  ;;  %v218_v34 = vmax.f32 %v186_v28, 0.0  ;;  %1547 = vmatprep.subr.bf16.mxu0 %v242_v29  ;;  %v170_v35 = vadd.f32 %v1846_v7, %v131_v30  ;;  %1725 = vmatprep.subr.bf16.mxu1 %v242_v29  ;;  %v1765_v7 = vld [vmem:[%s2122_s0 + $0xc0] ss:$8 sps:$4 sm:$0xff]   ;;  %v1762_v3 = vld [vmem:[%s2122_s0 + $0x94] ss:$8 sps:$4 sm:$0xff]  }
  0x26   :  { %v201_v36 = vmax.f32 %v169_v31, 0.0  ;;  %v1764_v5 = vld [vmem:[%s2122_s0 + $0x90] ss:$8 sps:$4 sm:$0xff]   ;;  %v1768_v6 = vld [vmem:[%s2122_s0 + $0xa4] ss:$8 sps:$4 sm:$0xff]  }
  0x27   :  { %1548 = vmatpush3.bf16.msra.mxu0 %v234_v32  ;;  %v241_v37 = vpack.c.bf16 %v218_v34, %v217_v33  ;;  %1733 = vmatpush3.bf16.msra.mxu1 %v234_v32  ;;  %v202_v38 = vmax.f32 %v170_v35, 0.0  ;;  %v1770_v10 = vld [vmem:[%s2122_s0 + $0xa0] ss:$8 sps:$4 sm:$0xff]   ;;  %v1774_v11 = vld [vmem:[%s2122_s0 + $0xb4] ss:$8 sps:$4 sm:$0xff]  }
  0x28   :  { %v1776_v13 = vld [vmem:[%s2122_s0 + $0xb0] ss:$8 sps:$4 sm:$0xff]  }
  0x29   :  { %1549 = vmatprep.subr.bf16.mxu0 %v241_v37  ;;  %1726 = vmatprep.subr.bf16.mxu1 %v241_v37  ;;  %v233_v39 = vpack.c.bf16 %v202_v38, %v201_v36 }
  0x2b   :  { %1550 = vmatpush3.bf16.msra.mxu0 %v233_v39  ;;  %1734 = vmatpush3.bf16.msra.mxu1 %v233_v39 }
  0x2c   :  { %1671 = vmatprep.subr.bf16.mxu1 %v1783_v1 }
  0x2e   :  { %506 = vmatmul.mubr.bf16.vlgmr.msra.gmra.mxu0 %v1735_v40  ;;  %602 = vmatmul.mubr.bf16.vlgmr.msra.gmra.mxu1 %v1765_v7 }
  0x2f   :  { %513 = vmatprep.mubr.bf16.mxu0 %v1738_v41  ;;  %609 = vmatprep.mubr.bf16.mxu1 %v1771_v42 }
  0x30   :  { %1672 = vmatpush3.bf16.msra.mxu1 %v1783_v1 }
  0x31   :  { %1673 = vmatprep.subr.bf16.mxu1 %v1784_v43 }
  0x34   :  { %1674 = vmatpush3.bf16.msra.mxu1 %v1784_v43 }
  0x35   :  { %1675 = vmatprep.subr.bf16.mxu1 %v1785_v44 }
  0x36   :  { %514 = vmatmul.mubr.bf16.gmra.mxu0 %v1740_v45  ;;  %610 = vmatmul.mubr.bf16.gmra.mxu1 %v1773_v46 }
  0x37   :  { %521 = vmatprep.mubr.bf16.mxu0 %v1741_v47  ;;  %617 = vmatprep.mubr.bf16.mxu1 %v1777_v48 }
  0x38   :  { %1676 = vmatpush3.bf16.msra.mxu1 %v1785_v44 }
  0x39   :  { %1677 = vmatprep.subr.bf16.mxu1 %v1786_v49 }
  0x3c   :  { %1678 = vmatpush3.bf16.msra.mxu1 %v1786_v49 }
  0x3d   :  { %1679 = vmatprep.subr.bf16.mxu1 %v1787_v4 }
  0x3e   :  { %522 = vmatmul.mubr.bf16.gmra.mxu0 %v1743_v50  ;;  %618 = vmatmul.mubr.bf16.gmra.mxu1 %v1779_v51 }
  0x3f   :  { %529 = vmatprep.mubr.bf16.mxu0 %v1744_v52  ;;  %625 = vmatprep.mubr.bf16.mxu1 %v1780_v53 }
  0x40   :  { %1680 = vmatpush3.bf16.msra.mxu1 %v1787_v4 }
  0x41   :  { %1681 = vmatprep.subr.bf16.mxu1 %v1788_v8 }
  0x44   :  { %1682 = vmatpush3.bf16.msra.mxu1 %v1788_v8 }
  0x45   :  { %1683 = vmatprep.subr.bf16.mxu1 %v1789_v9 }
  0x46   :  { %530 = vmatmul.mubr.bf16.gmra.mxu0 %v1746_v54  ;;  %626 = vmatmul.mubr.bf16.gmra.mxu1 %v1782_v55 }
  0x47   :  { %537 = vmatprep.mubr.bf16.mxu0 %v1747_v56 }
  0x48   :  { %1684 = vmatpush3.bf16.msra.mxu1 %v1789_v9 }
  0x49   :  { %1685 = vmatprep.subr.bf16.mxu1 %v1790_v12 }
  0x4c   :  { %1686 = vmatpush3.bf16.msra.mxu1 %v1790_v12 }
  0x4e   :  { %538 = vmatmul.mubr.bf16.gmra.mxu0 %v1749_v57 }
  0x4f   :  { %545 = vmatprep.mubr.bf16.mxu0 %v1750_v58 }
  0x56   :  { %546 = vmatmul.mubr.bf16.gmra.mxu0 %v1752_v59 }
  0x57   :  { %553 = vmatprep.mubr.bf16.mxu0 %v1753_v60 }
  0x5e   :  { %554 = vmatmul.mubr.bf16.gmra.mxu0 %v1755_v61 }
  0x5f   :  { %561 = vmatprep.mubr.bf16.mxu0 %v1756_v62 }
  0x66   :  { %562 = vmatmul.mubr.bf16.gmra.mxu0 %v1758_v63 }
  0x67   :  { %569 = vmatprep.mubr.bf16.mxu0 %v1759_v0 }
  0x6e   :  { %570 = vmatmul.mubr.bf16.gmra.mxu0 %v1761_v2 }
  0x6f   :  { %577 = vmatprep.mubr.bf16.mxu0 %v1762_v3 }
  0x76   :  { %578 = vmatmul.mubr.bf16.gmra.mxu0 %v1764_v5 }
  0x77   :  { %585 = vmatprep.mubr.bf16.mxu0 %v1768_v6 }
  0x7e   :  { %586 = vmatmul.mubr.bf16.gmra.mxu0 %v1770_v10 }
  0x7f   :  { %593 = vmatprep.mubr.bf16.mxu0 %v1774_v11 }
  0x86   :  { %594 = vmatmul.mubr.bf16.gmra.mxu0 %v1776_v13 }
  0xee   :  { %v1551_v14 = vpop.f32.mrf.mxu0  ;;  %v1623_v51 = vpop.f32.mrf.mxu1 }
  0xf0   :  { %v1552_v15 = vpop.f32.mrf.mxu0  ;;  %v1624_v57 = vpop.f32.mrf.mxu1 }
  0xf1   :  { %v1553_v18 = vadd.f32 %v1552_v15, %v1551_v14 }
  0xf2   :  { %v1554_v16 = vpop.f32.mrf.mxu0  ;;  %v1626_v60 = vpop.f32.mrf.mxu1 }
  0xf4   :  { %v1555_v17 = vpop.f32.mrf.mxu0  ;;  %v1627_v3 = vpop.f32.mrf.mxu1 }
  0xf5   :  { %v1556_v19 = vadd.f32 %v1555_v17, %v1554_v16 }
  0xf6   :  { %v1557_v20 = vpop.f32.mrf.mxu0  ;;  %v1629_v6 = vpop.f32.mrf.mxu1 }
  0xf7   :  { %v733_v21 = vpack.c.bf16 %v1556_v19, %v1553_v18 }
  0xf8   :  { %v1558_v22 = vpop.f32.mrf.mxu0  ;;  %v1630_v13 = vpop.f32.mrf.mxu1 }
  0xf9   :  { %1687 = vmatprep.mubr.bf16.mxu1 %v733_v21  ;;  %v1559_v25 = vadd.f32 %v1558_v22, %v1557_v20 }
  0xfa   :  { %v1560_v23 = vpop.f32.mrf.mxu0  ;;  %v1632_v16 = vpop.f32.mrf.mxu1 }
  0xfc   :  { %v1561_v24 = vpop.f32.mrf.mxu0  ;;  %v1633_v22 = vpop.f32.mrf.mxu1 }
  0xfd   :  { %v1562_v26 = vadd.f32 %v1561_v24, %v1560_v23 }
  0xfe   :  { %v1563_v27 = vpop.f32.mrf.mxu0 }
  0xff   :  { %v734_v28 = vpack.c.bf16 %v1562_v26, %v1559_v25  ;;  %v1635_v25 = vpop.f32.mrf.mxu1 }
 0x100   :  { %v1564_v29 = vpop.f32.mrf.mxu0 }
 0x101   :  { %1688 = vmatmul.mubr.bf16.vlgmr.msra.gmra.mxu1 %v734_v28  ;;  %v1565_v32 = vadd.f32 %v1564_v29, %v1563_v27 }
 0x102   :  { %v1566_v30 = vpop.f32.mrf.mxu0 }
 0x104   :  { %v1567_v31 = vpop.f32.mrf.mxu0 }
 0x105   :  { %v1568_v33 = vadd.f32 %v1567_v31, %v1566_v30  ;;  %v1636_v31 = vpop.f32.mrf.mxu1 }
 0x106   :  { %v1569_v34 = vpop.f32.mrf.mxu0 }
 0x107   :  { %v735_v35 = vpack.c.bf16 %v1568_v33, %v1565_v32 }
 0x108   :  { %v1570_v36 = vpop.f32.mrf.mxu0 }
 0x109   :  { %1691 = vmatprep.mubr.bf16.mxu1 %v735_v35  ;;  %v1571_v1 = vadd.f32 %v1570_v36, %v1569_v34  ;;  %v1638_v34 = vpop.f32.mrf.mxu1 }
 0x10a   :  { %v1572_v37 = vpop.f32.mrf.mxu0 }
 0x10c   :  { %v1573_v38 = vpop.f32.mrf.mxu0 }
 0x10d   :  { %v1574_v39 = vadd.f32 %v1573_v38, %v1572_v37 }
 0x10e   :  { %v1575_v40 = vpop.f32.mrf.mxu0 }
 0x10f   :  { %v736_v7 = vpack.c.bf16 %v1574_v39, %v1571_v1  ;;  %v1639_v39 = vpop.f32.mrf.mxu1 }
 0x110   :  { %v1576_v41 = vpop.f32.mrf.mxu0 }
 0x111   :  { %1692 = vmatmul.mubr.bf16.gmra.mxu1 %v736_v7  ;;  %v1577_v44 = vadd.f32 %v1576_v41, %v1575_v40  ;;  %v1625_v7 = vadd.f32 %v1624_v57, %v1623_v51  ;;  %v1628_v41 = vadd.f32 %v1627_v3, %v1626_v60 }
 0x112   :  { %v1578_v42 = vpop.f32.mrf.mxu0 }
 0x114   :  { %v1579_v43 = vpop.f32.mrf.mxu0 }
 0x115   :  { %v1580_v45 = vadd.f32 %v1579_v43, %v1578_v42  ;;  %v1641_v43 = vpop.f32.mrf.mxu1 }
 0x116   :  { %v1581_v46 = vpop.f32.mrf.mxu0 }
 0x117   :  { %v737_v47 = vpack.c.bf16 %v1580_v45, %v1577_v44 }
 0x118   :  { %v1582_v48 = vpop.f32.mrf.mxu0 }
 0x119   :  { %1695 = vmatprep.mubr.bf16.mxu1 %v737_v47  ;;  %v1583_v52 = vadd.f32 %v1582_v48, %v1581_v46  ;;  %v745_v47 = vpack.c.bf16 %v1628_v41, %v1625_v7  ;;  %v1642_v48 = vpop.f32.mrf.mxu1 }
 0x11a   :  { %v1584_v49 = vpop.f32.mrf.mxu0  ;;  %v1643_v51 = vadd.f32 %v1642_v48, %v1641_v43 }
 0x11c   :  { %v1585_v50 = vpop.f32.mrf.mxu0 }
 0x11d   :  { %v1586_v53 = vadd.f32 %v1585_v50, %v1584_v49  ;;  %v1631_v49 = vadd.f32 %v1630_v13, %v1629_v6  ;;  %v1634_v50 = vadd.f32 %v1633_v22, %v1632_v16 }
 0x11e   :  { %v1587_v54 = vpop.f32.mrf.mxu0 }
 0x11f   :  { %v738_v55 = vpack.c.bf16 %v1586_v53, %v1583_v52  ;;  %v1637_v52 = vadd.f32 %v1636_v31, %v1635_v25  ;;  %v1640_v53 = vadd.f32 %v1639_v39, %v1638_v34 }
 0x120   :  { %v1588_v56 = vpop.f32.mrf.mxu0 }
 0x121   :  { %1696 = vmatmul.mubr.bf16.gmra.mxu1 %v738_v55  ;;  %v1589_v61 = vadd.f32 %v1588_v56, %v1587_v54  ;;  %v1644_v54 = vpop.f32.mrf.mxu1  ;;  %v746_v55 = vpack.c.bf16 %v1634_v50, %v1631_v49  ;;  %v747_v56 = vpack.c.bf16 %v1640_v53, %v1637_v52 }
 0x122   :  { %v1590_v58 = vpop.f32.mrf.mxu0 }
 0x124   :  { %v1591_v59 = vpop.f32.mrf.mxu0 }
 0x125   :  { %v1592_v62 = vadd.f32 %v1591_v59, %v1590_v58  ;;  %v1645_v58 = vpop.f32.mrf.mxu1 }
 0x126   :  { %v1593_v63 = vpop.f32.mrf.mxu0  ;;  %v1646_v57 = vadd.f32 %v1645_v58, %v1644_v54 }
 0x127   :  { %v739_v0 = vpack.c.bf16 %v1592_v62, %v1589_v61 }
 0x128   :  { %v1594_v2 = vpop.f32.mrf.mxu0  ;;  %v748_v59 = vpack.c.bf16 %v1646_v57, %v1643_v51 }
 0x129   :  { %1699 = vmatprep.mubr.bf16.mxu1 %v739_v0  ;;  %v1595_v8 = vadd.f32 %v1594_v2, %v1593_v63 }
 0x12a   :  { %v1596_v4 = vpop.f32.mrf.mxu0 }
 0x12c   :  { %v1597_v5 = vpop.f32.mrf.mxu0 }
 0x12d   :  { %v1598_v9 = vadd.f32 %v1597_v5, %v1596_v4 }
 0x12e   :  { %v1599_v10 = vpop.f32.mrf.mxu0 }
 0x12f   :  { %v740_v11 = vpack.c.bf16 %v1598_v9, %v1595_v8 }
 0x130   :  { %v1600_v12 = vpop.f32.mrf.mxu0 }
 0x131   :  { %1700 = vmatmul.mubr.bf16.gmra.mxu1 %v740_v11  ;;  %v1601_v17 = vadd.f32 %v1600_v12, %v1599_v10 }
 0x132   :  { %v1602_v14 = vpop.f32.mrf.mxu0 }
 0x134   :  { %v1603_v15 = vpop.f32.mrf.mxu0 }
 0x135   :  { %v1604_v18 = vadd.f32 %v1603_v15, %v1602_v14 }
 0x136   :  { %v1605_v19 = vpop.f32.mrf.mxu0 }
 0x137   :  { %v741_v20 = vpack.c.bf16 %v1604_v18, %v1601_v17 }
 0x138   :  { %v1606_v21 = vpop.f32.mrf.mxu0 }
 0x139   :  { %1703 = vmatprep.mubr.bf16.mxu1 %v741_v20  ;;  %v1607_v26 = vadd.f32 %v1606_v21, %v1605_v19 }
 0x13a   :  { %v1608_v23 = vpop.f32.mrf.mxu0 }
 0x13c   :  { %v1609_v24 = vpop.f32.mrf.mxu0 }
 0x13d   :  { %v1610_v27 = vadd.f32 %v1609_v24, %v1608_v23 }
 0x13e   :  { %v1611_v28 = vpop.f32.mrf.mxu0 }
 0x13f   :  { %v742_v29 = vpack.c.bf16 %v1610_v27, %v1607_v26 }
 0x140   :  { %v1612_v30 = vpop.f32.mrf.mxu0 }
 0x141   :  { %1704 = vmatmul.mubr.bf16.gmra.mxu1 %v742_v29  ;;  %v1613_v35 = vadd.f32 %v1612_v30, %v1611_v28 }
 0x142   :  { %v1614_v32 = vpop.f32.mrf.mxu0 }
 0x144   :  { %v1615_v33 = vpop.f32.mrf.mxu0 }
 0x145   :  { %v1616_v36 = vadd.f32 %v1615_v33, %v1614_v32 }
 0x146   :  { %v1617_v37 = vpop.f32.mrf.mxu0 }
 0x147   :  { %v743_v38 = vpack.c.bf16 %v1616_v36, %v1613_v35 }
 0x148   :  { %v1618_v1 = vpop.f32.mrf.mxu0 }
 0x149   :  { %1707 = vmatprep.mubr.bf16.mxu1 %v743_v38  ;;  %v1619_v44 = vadd.f32 %v1618_v1, %v1617_v37 }
 0x14a   :  { %v1620_v40 = vpop.f32.mrf.mxu0 }
 0x14c   :  { %v1621_v42 = vpop.f32.mrf.mxu0 }
 0x14d   :  { %v1622_v45 = vadd.f32 %v1621_v42, %v1620_v40 }
 0x14f   :  { %v744_v46 = vpack.c.bf16 %v1622_v45, %v1619_v44 }
 0x151   :  { %1708 = vmatmul.mubr.bf16.gmra.mxu1 %v744_v46 }
 0x152   :  { %1711 = vmatprep.mubr.bf16.mxu1 %v745_v47 }
 0x159   :  { %1712 = vmatmul.mubr.bf16.gmra.mxu1 %v746_v55 }
 0x15a   :  { %1715 = vmatprep.mubr.bf16.mxu1 %v747_v56 }
 0x161   :  { %1716 = vmatmul.mubr.bf16.gmra.mxu1 %v748_v59 }
 0x1c1   :  { %v1689_v60 = vpop.f32.mrf.mxu1 }
 0x1c2   :  { %v1173_v14 = vmul.f32 %v1689_v60, %v1689_v60 }
 0x1c3   :  { %v847_v61 = vpop.f32.mrf.mxu1 }
 0x1c4   :  { %v1171_v11 = vmul.f32 %v847_v61, %v847_v61 }
 0x1c5   :  { %v1690_v62 = vpop.f32.mrf.mxu1 }
 0x1c6   :  { %v1433_v63 = vpack.c.bf16 %v1690_v62, %v1689_v60  ;;  %v1174_v19 = vmul.f32 %v1690_v62, %v1690_v62 }
 0x1c7   :  { %v850_v0 = vpop.f32.mrf.mxu1 }
 0x1c8   :  { %1520 = vst [vmem:[%s2124_s5 + $0x8] sm:$0xff] %v1433_v63   ;;  %v1428_v2 = vpack.c.bf16 %v850_v0, %v847_v61  ;;  %v1172_v10 = vmul.f32 %v850_v0, %v850_v0  ;;  %v1134_v12 = vadd.f32 %v850_v0, %v847_v61 }
 0x1ca   :  { %1429 = vst [vmem:[%s2124_s5] sm:$0xff] %v1428_v2   ;;  %v1203_v13 = vadd.f32 %v1172_v10, %v1171_v11  ;;  %v1135_v15 = vadd.f32 %v1689_v60, %v1134_v12 }
 0x1cc   :  { %v1204_v17 = vadd.f32 %v1203_v13, %v1173_v14  ;;  %v1136_v20 = vadd.f32 %v1690_v62, %v1135_v15 }
 0x1ce   :  { %v1205_v24 = vadd.f32 %v1204_v17, %v1174_v19 }
 0x1d1   :  { %v1693_v3 = vpop.f32.mrf.mxu1 }
 0x1d2   :  { %v1177_v32 = vmul.f32 %v1693_v3, %v1693_v3 }
 0x1d3   :  { %v863_v4 = vpop.f32.mrf.mxu1 }
 0x1d4   :  { %v1175_v21 = vmul.f32 %v863_v4, %v863_v4  ;;  %v1137_v23 = vadd.f32 %v1136_v20, %v863_v4 }
 0x1d5   :  { %v1694_v5 = vpop.f32.mrf.mxu1 }
 0x1d6   :  { %v1443_v6 = vpack.c.bf16 %v1694_v5, %v1693_v3  ;;  %v1206_v28 = vadd.f32 %v1205_v24, %v1175_v21  ;;  %v1178_v35 = vmul.f32 %v1694_v5, %v1694_v5 }
 0x1d7   :  { %v866_v8 = vpop.f32.mrf.mxu1 }
 0x1d8   :  { %1522 = vst [vmem:[%s2124_s5 + $0x18] sm:$0xff] %v1443_v6   ;;  %v1438_v9 = vpack.c.bf16 %v866_v8, %v863_v4  ;;  %v1176_v25 = vmul.f32 %v866_v8, %v866_v8  ;;  %v1138_v29 = vadd.f32 %v1137_v23, %v866_v8 }
 0x1da   :  { %1521 = vst [vmem:[%s2124_s5 + $0x10] sm:$0xff] %v1438_v9   ;;  %v1207_v31 = vadd.f32 %v1206_v28, %v1176_v25  ;;  %v1139_v33 = vadd.f32 %v1693_v3, %v1138_v29 }
 0x1dc   :  { %v1208_v34 = vadd.f32 %v1207_v31, %v1177_v32  ;;  %v1140_v36 = vadd.f32 %v1694_v5, %v1139_v33 }
 0x1de   :  { %v1209_v39 = vadd.f32 %v1208_v34, %v1178_v35 }
 0x1e1   :  { %v1697_v16 = vpop.f32.mrf.mxu1 }
 0x1e2   :  { %v1181_v47 = vmul.f32 %v1697_v16, %v1697_v16 }
 0x1e3   :  { %v879_v18 = vpop.f32.mrf.mxu1 }
 0x1e4   :  { %v1179_v37 = vmul.f32 %v879_v18, %v879_v18  ;;  %v1141_v1 = vadd.f32 %v1140_v36, %v879_v18 }
 0x1e5   :  { %v1698_v22 = vpop.f32.mrf.mxu1 }
 0x1e6   :  { %v1453_v26 = vpack.c.bf16 %v1698_v22, %v1697_v16  ;;  %v1210_v41 = vadd.f32 %v1209_v39, %v1179_v37  ;;  %v1182_v52 = vmul.f32 %v1698_v22, %v1698_v22 }
 0x1e7   :  { %v882_v27 = vpop.f32.mrf.mxu1 }
 0x1e8   :  { %1524 = vst [vmem:[%s2124_s5 + $0x28] sm:$0xff] %v1453_v26   ;;  %v1448_v30 = vpack.c.bf16 %v882_v27, %v879_v18  ;;  %v1180_v40 = vmul.f32 %v882_v27, %v882_v27  ;;  %v1142_v42 = vadd.f32 %v1141_v1, %v882_v27 }
 0x1ea   :  { %1523 = vst [vmem:[%s2124_s5 + $0x20] sm:$0xff] %v1448_v30   ;;  %v1211_v44 = vadd.f32 %v1210_v41, %v1180_v40  ;;  %v1143_v48 = vadd.f32 %v1697_v16, %v1142_v42 }
 0x1ec   :  { %v1212_v50 = vadd.f32 %v1211_v44, %v1181_v47  ;;  %v1144_v53 = vadd.f32 %v1698_v22, %v1143_v48 }
 0x1ee   :  { %v1213_v56 = vadd.f32 %v1212_v50, %v1182_v52 }
 0x1f1   :  { %v1701_v38 = vpop.f32.mrf.mxu1 }
 0x1f2   :  { %v1185_v62 = vmul.f32 %v1701_v38, %v1701_v38 }
 0x1f3   :  { %v895_v7 = vpop.f32.mrf.mxu1 }
 0x1f4   :  { %v1183_v54 = vmul.f32 %v895_v7, %v895_v7  ;;  %v1145_v55 = vadd.f32 %v1144_v53, %v895_v7 }
 0x1f5   :  { %v1702_v43 = vpop.f32.mrf.mxu1 }
 0x1f6   :  { %v1463_v45 = vpack.c.bf16 %v1702_v43, %v1701_v38  ;;  %v1214_v51 = vadd.f32 %v1213_v56, %v1183_v54  ;;  %v1186_v5 = vmul.f32 %v1702_v43, %v1702_v43 }
 0x1f7   :  { %v898_v46 = vpop.f32.mrf.mxu1 }
 0x1f8   :  { %1526 = vst [vmem:[%s2124_s5 + $0x38] sm:$0xff] %v1463_v45   ;;  %v1458_v49 = vpack.c.bf16 %v898_v46, %v895_v7  ;;  %v1184_v58 = vmul.f32 %v898_v46, %v898_v46  ;;  %v1146_v57 = vadd.f32 %v1145_v55, %v898_v46 }
 0x1fa   :  { %1525 = vst [vmem:[%s2124_s5 + $0x30] sm:$0xff] %v1458_v49   ;;  %v1215_v60 = vadd.f32 %v1214_v51, %v1184_v58  ;;  %v1147_v63 = vadd.f32 %v1701_v38, %v1146_v57 }
 0x1fc   :  { %v1216_v2 = vadd.f32 %v1215_v60, %v1185_v62  ;;  %v1148_v6 = vadd.f32 %v1702_v43, %v1147_v63 }
 0x1fe   :  { %v1217_v11 = vadd.f32 %v1216_v2, %v1186_v5 }
 0x201   :  { %v1705_v59 = vpop.f32.mrf.mxu1 }
 0x202   :  { %v1189_v16 = vmul.f32 %v1705_v59, %v1705_v59 }
 0x203   :  { %v911_v61 = vpop.f32.mrf.mxu1 }
 0x204   :  { %v1187_v8 = vmul.f32 %v911_v61, %v911_v61  ;;  %v1149_v10 = vadd.f32 %v1148_v6, %v911_v61 }
 0x205   :  { %v1706_v0 = vpop.f32.mrf.mxu1 }
 0x206   :  { %v1473_v3 = vpack.c.bf16 %v1706_v0, %v1705_v59  ;;  %v1218_v13 = vadd.f32 %v1217_v11, %v1187_v8  ;;  %v1190_v21 = vmul.f32 %v1706_v0, %v1706_v0 }
 0x207   :  { %v914_v4 = vpop.f32.mrf.mxu1 }
 0x208   :  { %1528 = vst [vmem:[%s2124_s5 + $0x48] sm:$0xff] %v1473_v3   ;;  %v1468_v9 = vpack.c.bf16 %v914_v4, %v911_v61  ;;  %v1188_v12 = vmul.f32 %v914_v4, %v914_v4  ;;  %v1150_v14 = vadd.f32 %v1149_v10, %v914_v4 }
 0x20a   :  { %1527 = vst [vmem:[%s2124_s5 + $0x40] sm:$0xff] %v1468_v9   ;;  %v1219_v15 = vadd.f32 %v1218_v13, %v1188_v12  ;;  %v1151_v17 = vadd.f32 %v1705_v59, %v1150_v14 }
 0x20c   :  { %v1220_v19 = vadd.f32 %v1219_v15, %v1189_v16  ;;  %v1152_v22 = vadd.f32 %v1706_v0, %v1151_v17  ;;  %v1240_v15 = vlaneseq }
 0x20e   :  { %v1221_v26 = vadd.f32 %v1220_v19, %v1190_v21 }
 0x211   :  { %v1709_v18 = vpop.f32.mrf.mxu1 }
 0x212   :  { %v1193_v34 = vmul.f32 %v1709_v18, %v1709_v18 }
 0x213   :  { %v927_v20 = vpop.f32.mrf.mxu1 }
 0x214   :  { %v1191_v23 = vmul.f32 %v927_v20, %v927_v20  ;;  %v1153_v25 = vadd.f32 %v1152_v22, %v927_v20 }
 0x215   :  { %v1710_v24 = vpop.f32.mrf.mxu1 }
 0x216   :  { %v1483_v27 = vpack.c.bf16 %v1710_v24, %v1709_v18  ;;  %v1222_v29 = vadd.f32 %v1221_v26, %v1191_v23  ;;  %v1194_v38 = vmul.f32 %v1710_v24, %v1710_v24 }
 0x217   :  { %v930_v28 = vpop.f32.mrf.mxu1 }
 0x218   :  { %1530 = vst [vmem:[%s2124_s5 + $0x58] sm:$0xff] %v1483_v27   ;;  %v1478_v30 = vpack.c.bf16 %v930_v28, %v927_v20  ;;  %v1154_v31 = vadd.f32 %v1153_v25, %v930_v28  ;;  %v1192_v32 = vmul.f32 %v930_v28, %v930_v28  ;;  %v1241_v20 = vshrl.u32 %v1240_v15, 7 }
 0x219   :  { %v1713_v33 = vpop.f32.mrf.mxu1 }
 0x21a   :  { %1529 = vst [vmem:[%s2124_s5 + $0x50] sm:$0xff] %v1478_v30   ;;  %v1155_v35 = vadd.f32 %v1709_v18, %v1154_v31  ;;  %v1223_v36 = vadd.f32 %v1222_v29, %v1192_v32  ;;  %v1197_v50 = vmul.f32 %v1713_v33, %v1713_v33  ;;  %vm1243_vm0 = vcmp.eq.s32.totalorder %v1241_v20, 1 }
 0x21b   :  { %v943_v37 = vpop.f32.mrf.mxu1  ;;  %vm1242_vm1 = vcmp.eq.s32.totalorder %v1241_v20, 0 }
 0x21c   :  { %v1224_v1 = vadd.f32 %v1223_v36, %v1193_v34  ;;  %v1156_v39 = vadd.f32 %v1710_v24, %v1155_v35  ;;  %v1195_v41 = vmul.f32 %v943_v37, %v943_v37 }
 0x21d   :  { %v1714_v40 = vpop.f32.mrf.mxu1 }
 0x21e   :  { %v1157_v7 = vadd.f32 %v1156_v39, %v943_v37  ;;  %v1225_v42 = vadd.f32 %v1224_v1, %v1194_v38  ;;  %v1493_v43 = vpack.c.bf16 %v1714_v40, %v1713_v33  ;;  %v1198_v55 = vmul.f32 %v1714_v40, %v1714_v40 }
 0x21f   :  { %v946_v44 = vpop.f32.mrf.mxu1 }
 0x220   :  { %v1226_v45 = vadd.f32 %v1225_v42, %v1195_v41  ;;  %1532 = vst [vmem:[%s2124_s5 + $0x68] sm:$0xff] %v1493_v43   ;;  %v1488_v46 = vpack.c.bf16 %v946_v44, %v943_v37  ;;  %v1158_v47 = vadd.f32 %v1157_v7, %v946_v44  ;;  %v1196_v48 = vmul.f32 %v946_v44, %v946_v44 }
 0x221   :  { %v1717_v49 = vpop.f32.mrf.mxu1 }
 0x222   :  { %1531 = vst [vmem:[%s2124_s5 + $0x60] sm:$0xff] %v1488_v46   ;;  %v1159_v52 = vadd.f32 %v1713_v33, %v1158_v47  ;;  %v1227_v53 = vadd.f32 %v1226_v45, %v1196_v48  ;;  %v1201_v4 = vmul.f32 %v1717_v49, %v1717_v49 }
 0x223   :  { %v959_v54 = vpop.f32.mrf.mxu1 }
 0x224   :  { %v1228_v56 = vadd.f32 %v1227_v53, %v1197_v50  ;;  %v1160_v58 = vadd.f32 %v1714_v40, %v1159_v52  ;;  %v1199_v59 = vmul.f32 %v959_v54, %v959_v54 }
 0x225   :  { %v1718_v51 = vpop.f32.mrf.mxu1 }
 0x226   :  { %v1161_v57 = vadd.f32 %v1160_v58, %v959_v54  ;;  %v1229_v60 = vadd.f32 %v1228_v56, %v1198_v55  ;;  %v1503_v61 = vpack.c.bf16 %v1718_v51, %v1717_v49  ;;  %v1202_v8 = vmul.f32 %v1718_v51, %v1718_v51 }
 0x227   :  { %v962_v62 = vpop.f32.mrf.mxu1 }
 0x228   :  { %v1230_v63 = vadd.f32 %v1229_v60, %v1199_v59  ;;  %1534 = vst [vmem:[%s2124_s5 + $0x78] sm:$0xff] %v1503_v61   ;;  %v1498_v0 = vpack.c.bf16 %v962_v62, %v959_v54  ;;  %v1162_v2 = vadd.f32 %v1161_v57, %v962_v62  ;;  %v1200_v3 = vmul.f32 %v962_v62, %v962_v62 }
 0x22a   :  { %1533 = vst [vmem:[%s2124_s5 + $0x70] sm:$0xff] %v1498_v0   ;;  %v1163_v5 = vadd.f32 %v1717_v49, %v1162_v2  ;;  %v1231_v6 = vadd.f32 %v1230_v63, %v1200_v3 }
 0x22c   :  { %v1164_v9 = vadd.f32 %v1718_v51, %v1163_v5  ;;  %v1232_v10 = vadd.f32 %v1231_v6, %v1201_v4 }
 0x22e   :  { %v1165_v11 = vrot.slane %v1164_v9, 4  ;;  %v1233_v12 = vadd.f32 %v1232_v10, %v1202_v8 }
 0x230   :  { %v1166_v13 = vadd.f32 %v1165_v11, %v1164_v9  ;;  %v1234_v14 = vrot.slane %v1233_v12, 4 }
 0x232   :  { %v1167_v16 = vrot.slane %v1166_v13, 2  ;;  %v1235_v17 = vadd.f32 %v1234_v14, %v1233_v12 }
 0x234   :  { %v1168_v18 = vadd.f32 %v1167_v16, %v1166_v13  ;;  %v1236_v19 = vrot.slane %v1235_v17, 2 }
 0x236   :  { %v1237_v21 = vadd.f32 %v1236_v19, %v1235_v17  ;;  %v1169_v22 = vrot.slane %v1168_v18, 1 }
 0x238   :  { %v1238_v23 = vrot.slane %v1237_v21, 1  ;;  %v1170_v25 = vadd.f32 %v1169_v22, %v1168_v18 }
 0x23a   :  { %v1239_v24 = vadd.f32 %v1238_v23, %v1237_v21 }
 0x23c   :  { %v1244_v26 = vsel %vm1243_vm0, %v1239_v24, 0.0 }
 0x23d   :  { %v1245_v27 = vsel %vm1242_vm1, %v1170_v25, %v1244_v26 }
 0x23e   :  { %1246 = vst [vmem:[%s2125_s6] sm:$0xff] %v1245_v27 }

// kernel: _lambda_.7
= control target key start
LH: loop header
LB: loop body
LE: loop exit
PB: predicated region body
PF: predicated region fallthrough
CT: control target
= control target key end

     0   :  { %s774_s0 = inlined_call_operand.vmem [shape: bf16[256,128], index: 0, kind: input, shape index: {}]   ;;  %s775_s1 = inlined_call_operand.vmem [shape: f32[1,128], index: 1, kind: input, shape index: {}]   ;;  %s776_s2 = inlined_call_operand.vmem [shape: f32[1,128], index: 2, kind: input, shape index: {}]   ;;  %s777_s3 = inlined_call_operand.vmem [shape: bf16[256,128], index: 3, kind: input, shape index: {}]   ;;  %s778_s4 = inlined_call_operand.vmem [shape: f32[256,128], index: 4, kind: output, shape index: {}]  }
   0x1   :  { %v326_v0 = vld [vmem:[%s774_s0] sm:$0xff]   ;;  %v453_v5 = vld [vmem:[%s774_s0 + $0x8] sm:$0xff]   ;;  %v454_v12 = vld [vmem:[%s774_s0 + $0x10] sm:$0xff]  }
   0x2   :  { %v514_v1 = vld [vmem:[%s775_s1] ss:$0 sm:$0xff]  ;;  %v327_v2 = vunpack.c.l.bf16 %v326_v0  ;;  %v328_v4 = vunpack.c.h.bf16 %v326_v0  ;;  %v468_v6 = vld [vmem:[%s777_s3 + $0x8] sm:$0xff]   ;;  %v331_v10 = vunpack.c.l.bf16 %v453_v5  ;;  %v469_v13 = vld [vmem:[%s777_s3 + $0x10] sm:$0xff]   ;;  %v332_v16 = vunpack.c.h.bf16 %v453_v5 }
   0x3   :  { %v390_v3 = vld [vmem:[%s777_s3] sm:$0xff]   ;;  %v395_v11 = vunpack.c.l.bf16 %v468_v6  ;;  %v396_v17 = vunpack.c.h.bf16 %v468_v6  ;;  %v455_v18 = vld [vmem:[%s774_s0 + $0x18] sm:$0xff]   ;;  %v335_v20 = vunpack.c.l.bf16 %v454_v12  ;;  %v399_v21 = vunpack.c.l.bf16 %v469_v13  ;;  %v457_v54 = vld [vmem:[%s774_s0 + $0x28] sm:$0xff]  }
   0x4   :  { %v528_v7 = vld [vmem:[%s776_s2] ss:$0 sm:$0xff]  ;;  %v391_v8 = vunpack.c.l.bf16 %v390_v3  ;;  %v392_v9 = vunpack.c.h.bf16 %v390_v3  ;;  %v88_v14 = vmul.f32 %v327_v2, %v514_v1  ;;  %v89_v15 = vmul.f32 %v328_v4, %v514_v1  ;;  %v470_v23 = vld [vmem:[%s777_s3 + $0x18] sm:$0xff]   ;;  %v472_v55 = vld [vmem:[%s777_s3 + $0x28] sm:$0xff]  }
   0x5   :  { %v90_v19 = vmul.f32 %v331_v10, %v514_v1  ;;  %v336_v22 = vunpack.c.h.bf16 %v454_v12  ;;  %v91_v26 = vmul.f32 %v332_v16, %v514_v1  ;;  %v400_v27 = vunpack.c.h.bf16 %v469_v13  ;;  %v456_v40 = vld [vmem:[%s774_s0 + $0x20] sm:$0xff]   ;;  %v458_v0 = vld [vmem:[%s774_s0 + $0x30] sm:$0xff]   ;;  %v459_v16 = vld [vmem:[%s774_s0 + $0x38] sm:$0xff]  }
   0x6   :  { %v127_v24 = vadd.f32 %v528_v7, %v88_v14  ;;  %v128_v25 = vadd.f32 %v528_v7, %v89_v15  ;;  %v92_v29 = vmul.f32 %v335_v20, %v514_v1  ;;  %v339_v31 = vunpack.c.l.bf16 %v455_v18  ;;  %v471_v45 = vld [vmem:[%s777_s3 + $0x20] sm:$0xff]   ;;  %v473_v2 = vld [vmem:[%s777_s3 + $0x30] sm:$0xff]  }
   0x7   :  { %v129_v28 = vadd.f32 %v528_v7, %v90_v19  ;;  %v93_v30 = vmul.f32 %v336_v22, %v514_v1  ;;  %v130_v34 = vadd.f32 %v528_v7, %v91_v26  ;;  %v403_v35 = vunpack.c.l.bf16 %v470_v23 }
   0x8   :  { %v223_v32 = vadd.f32 %v391_v8, %v127_v24  ;;  %v224_v33 = vadd.f32 %v392_v9, %v128_v25  ;;  %v131_v37 = vadd.f32 %v528_v7, %v92_v29  ;;  %v94_v39 = vmul.f32 %v339_v31, %v514_v1 }
   0x9   :  { %v225_v36 = vadd.f32 %v395_v11, %v129_v28  ;;  %v132_v38 = vadd.f32 %v528_v7, %v93_v30  ;;  %v226_v43 = vadd.f32 %v396_v17, %v130_v34  ;;  %v340_v44 = vunpack.c.h.bf16 %v455_v18  ;;  %v460_v34 = vld [vmem:[%s774_s0 + $0x40] sm:$0xff]  }
   0xa   :  { %v255_v41 = vmax.f32 %v223_v32, 0.0  ;;  %v256_v42 = vmax.f32 %v224_v33, 0.0  ;;  %v227_v47 = vadd.f32 %v399_v21, %v131_v37  ;;  %v133_v49 = vadd.f32 %v528_v7, %v94_v39  ;;  %v474_v21 = vld [vmem:[%s777_s3 + $0x38] sm:$0xff]   ;;  %v475_v39 = vld [vmem:[%s777_s3 + $0x40] sm:$0xff]  }
   0xb   :  { %v257_v46 = vmax.f32 %v225_v36, 0.0  ;;  %v228_v48 = vadd.f32 %v400_v27, %v132_v38  ;;  %v258_v50 = vmax.f32 %v226_v43, 0.0  ;;  %v95_v51 = vmul.f32 %v340_v44, %v514_v1 }
   0xc   :  { %287 = vst [vmem:[%s778_s4] sm:$0xff] %v255_v41  ;;  %288 = vst [vmem:[%s778_s4 + $0x8] sm:$0xff] %v256_v42  ;;  %v404_v52 = vunpack.c.h.bf16 %v470_v23  ;;  %v343_v53 = vunpack.c.l.bf16 %v456_v40  ;;  %v259_v56 = vmax.f32 %v227_v47, 0.0  ;;  %v229_v58 = vadd.f32 %v403_v35, %v133_v49  ;;  %v476_v49 = vld [vmem:[%s777_s3 + $0x48] sm:$0xff]  }
   0xd   :  { %289 = vst [vmem:[%s778_s4 + $0x10] sm:$0xff] %v257_v46  ;;  %v260_v57 = vmax.f32 %v228_v48, 0.0  ;;  %v407_v59 = vunpack.c.l.bf16 %v471_v45  ;;  %290 = vst [vmem:[%s778_s4 + $0x18] sm:$0xff] %v258_v50  ;;  %v134_v60 = vadd.f32 %v528_v7, %v95_v51  ;;  %v344_v62 = vunpack.c.h.bf16 %v456_v40  ;;  %v461_v48 = vld [vmem:[%s774_s0 + $0x48] sm:$0xff]  }
   0xe   :  { %v96_v61 = vmul.f32 %v343_v53, %v514_v1  ;;  %v408_v63 = vunpack.c.h.bf16 %v471_v45  ;;  %291 = vst [vmem:[%s778_s4 + $0x20] sm:$0xff] %v259_v56  ;;  %v261_v3 = vmax.f32 %v229_v58, 0.0  ;;  %v347_v4 = vunpack.c.l.bf16 %v457_v54  ;;  %v462_v58 = vld [vmem:[%s774_s0 + $0x50] sm:$0xff]  }
   0xf   :  { %292 = vst [vmem:[%s778_s4 + $0x28] sm:$0xff] %v260_v57  ;;  %v411_v5 = vunpack.c.l.bf16 %v472_v55  ;;  %v348_v6 = vunpack.c.h.bf16 %v457_v54  ;;  %v230_v8 = vadd.f32 %v404_v52, %v134_v60  ;;  %v97_v10 = vmul.f32 %v344_v62, %v514_v1 }
  0x10   :  { %v135_v9 = vadd.f32 %v528_v7, %v96_v61  ;;  %v412_v11 = vunpack.c.h.bf16 %v472_v55  ;;  %293 = vst [vmem:[%s778_s4 + $0x30] sm:$0xff] %v261_v3  ;;  %v98_v12 = vmul.f32 %v347_v4, %v514_v1  ;;  %v351_v14 = vunpack.c.l.bf16 %v458_v0 }
  0x11   :  { %v99_v13 = vmul.f32 %v348_v6, %v514_v1  ;;  %v415_v15 = vunpack.c.l.bf16 %v473_v2  ;;  %v262_v17 = vmax.f32 %v230_v8, 0.0  ;;  %v136_v19 = vadd.f32 %v528_v7, %v97_v10  ;;  %v463_v10 = vld [vmem:[%s774_s0 + $0x58] sm:$0xff]  }
  0x12   :  { %v231_v18 = vadd.f32 %v407_v59, %v135_v9  ;;  %v352_v20 = vunpack.c.h.bf16 %v458_v0  ;;  %v137_v22 = vadd.f32 %v528_v7, %v98_v12  ;;  %v100_v24 = vmul.f32 %v351_v14, %v514_v1 }
  0x13   :  { %v138_v23 = vadd.f32 %v528_v7, %v99_v13  ;;  %v416_v25 = vunpack.c.h.bf16 %v473_v2  ;;  %294 = vst [vmem:[%s778_s4 + $0x38] sm:$0xff] %v262_v17  ;;  %v232_v27 = vadd.f32 %v408_v63, %v136_v19  ;;  %v355_v29 = vunpack.c.l.bf16 %v459_v16  ;;  %v477_v63 = vld [vmem:[%s777_s3 + $0x50] sm:$0xff]   ;;  %v478_v19 = vld [vmem:[%s777_s3 + $0x58] sm:$0xff]  }
  0x14   :  { %v263_v26 = vmax.f32 %v231_v18, 0.0  ;;  %v101_v28 = vmul.f32 %v352_v20, %v514_v1  ;;  %v233_v30 = vadd.f32 %v411_v5, %v137_v22  ;;  %v139_v32 = vadd.f32 %v528_v7, %v100_v24 }
  0x15   :  { %v234_v31 = vadd.f32 %v412_v11, %v138_v23  ;;  %v419_v33 = vunpack.c.l.bf16 %v474_v21  ;;  %v264_v35 = vmax.f32 %v232_v27, 0.0  ;;  %v102_v37 = vmul.f32 %v355_v29, %v514_v1 }
  0x16   :  { %295 = vst [vmem:[%s778_s4 + $0x40] sm:$0xff] %v263_v26  ;;  %v140_v36 = vadd.f32 %v528_v7, %v101_v28  ;;  %v356_v38 = vunpack.c.h.bf16 %v459_v16  ;;  %v265_v40 = vmax.f32 %v233_v30, 0.0  ;;  %v235_v42 = vadd.f32 %v415_v15, %v139_v32  ;;  %v464_v28 = vld [vmem:[%s774_s0 + $0x60] sm:$0xff]  }
  0x17   :  { %v266_v41 = vmax.f32 %v234_v31, 0.0  ;;  %v420_v43 = vunpack.c.h.bf16 %v474_v21  ;;  %296 = vst [vmem:[%s778_s4 + $0x48] sm:$0xff] %v264_v35  ;;  %v141_v45 = vadd.f32 %v528_v7, %v102_v37  ;;  %v359_v47 = vunpack.c.l.bf16 %v460_v34 }
  0x18   :  { %v236_v44 = vadd.f32 %v416_v25, %v140_v36  ;;  %v103_v46 = vmul.f32 %v356_v38, %v514_v1  ;;  %297 = vst [vmem:[%s778_s4 + $0x50] sm:$0xff] %v265_v40  ;;  %v267_v50 = vmax.f32 %v235_v42, 0.0  ;;  %v423_v51 = vunpack.c.l.bf16 %v475_v39  ;;  %v465_v42 = vld [vmem:[%s774_s0 + $0x68] sm:$0xff]  }
  0x19   :  { %298 = vst [vmem:[%s778_s4 + $0x58] sm:$0xff] %v266_v41  ;;  %v360_v52 = vunpack.c.h.bf16 %v460_v34  ;;  %v424_v53 = vunpack.c.h.bf16 %v475_v39  ;;  %v237_v55 = vadd.f32 %v419_v33, %v141_v45  ;;  %v104_v57 = vmul.f32 %v359_v47, %v514_v1  ;;  %v479_v33 = vld [vmem:[%s777_s3 + $0x60] sm:$0xff]  }
  0x1a   :  { %v268_v54 = vmax.f32 %v236_v44, 0.0  ;;  %v142_v56 = vadd.f32 %v528_v7, %v103_v46  ;;  %299 = vst [vmem:[%s778_s4 + $0x60] sm:$0xff] %v267_v50  ;;  %v363_v60 = vunpack.c.l.bf16 %v461_v48  ;;  %v427_v61 = vunpack.c.l.bf16 %v476_v49 }
  0x1b   :  { %v105_v59 = vmul.f32 %v360_v52, %v514_v1  ;;  %v364_v62 = vunpack.c.h.bf16 %v461_v48  ;;  %v269_v0 = vmax.f32 %v237_v55, 0.0  ;;  %v143_v3 = vadd.f32 %v528_v7, %v104_v57  ;;  %v466_v52 = vld [vmem:[%s774_s0 + $0x70] sm:$0xff]  }
  0x1c   :  { %300 = vst [vmem:[%s778_s4 + $0x68] sm:$0xff] %v268_v54  ;;  %v238_v2 = vadd.f32 %v420_v43, %v142_v56  ;;  %v428_v4 = vunpack.c.h.bf16 %v476_v49  ;;  %v106_v6 = vmul.f32 %v363_v60, %v514_v1  ;;  %v367_v9 = vunpack.c.l.bf16 %v462_v58  ;;  %v480_v43 = vld [vmem:[%s777_s3 + $0x68] sm:$0xff]   ;;  %v481_v57 = vld [vmem:[%s777_s3 + $0x70] sm:$0xff]  }
  0x1d   :  { %v144_v5 = vadd.f32 %v528_v7, %v105_v59  ;;  %v107_v8 = vmul.f32 %v364_v62, %v514_v1  ;;  %301 = vst [vmem:[%s778_s4 + $0x70] sm:$0xff] %v269_v0  ;;  %v239_v12 = vadd.f32 %v423_v51, %v143_v3  ;;  %v431_v13 = vunpack.c.l.bf16 %v477_v63  ;;  %v467_v3 = vld [vmem:[%s774_s0 + $0x78] sm:$0xff]  }
  0x1e   :  { %v270_v11 = vmax.f32 %v238_v2, 0.0  ;;  %v368_v14 = vunpack.c.h.bf16 %v462_v58  ;;  %v145_v16 = vadd.f32 %v528_v7, %v106_v6  ;;  %v108_v18 = vmul.f32 %v367_v9, %v514_v1 }
  0x1f   :  { %v240_v15 = vadd.f32 %v424_v53, %v144_v5  ;;  %v146_v17 = vadd.f32 %v528_v7, %v107_v8  ;;  %v271_v20 = vmax.f32 %v239_v12, 0.0  ;;  %v432_v22 = vunpack.c.h.bf16 %v477_v63 }
  0x20   :  { %302 = vst [vmem:[%s778_s4 + $0x78] sm:$0xff] %v270_v11  ;;  %v109_v21 = vmul.f32 %v368_v14, %v514_v1  ;;  %v371_v23 = vunpack.c.l.bf16 %v463_v10  ;;  %v241_v25 = vadd.f32 %v427_v61, %v145_v16  ;;  %v147_v27 = vadd.f32 %v528_v7, %v108_v18 }
  0x21   :  { %v272_v24 = vmax.f32 %v240_v15, 0.0  ;;  %v242_v26 = vadd.f32 %v428_v4, %v146_v17  ;;  %303 = vst [vmem:[%s778_s4 + $0x80] sm:$0xff] %v271_v20  ;;  %v435_v31 = vunpack.c.l.bf16 %v478_v19  ;;  %v372_v32 = vunpack.c.h.bf16 %v463_v10 }
  0x22   :  { %v148_v29 = vadd.f32 %v528_v7, %v109_v21  ;;  %v110_v30 = vmul.f32 %v371_v23, %v514_v1  ;;  %v273_v34 = vmax.f32 %v241_v25, 0.0  ;;  %v243_v36 = vadd.f32 %v431_v13, %v147_v27  ;;  %v482_v13 = vld [vmem:[%s777_s3 + $0x78] sm:$0xff]  }
  0x23   :  { %304 = vst [vmem:[%s778_s4 + $0x88] sm:$0xff] %v272_v24  ;;  %v274_v35 = vmax.f32 %v242_v26, 0.0  ;;  %v436_v37 = vunpack.c.h.bf16 %v478_v19  ;;  %v111_v40 = vmul.f32 %v372_v32, %v514_v1  ;;  %v375_v41 = vunpack.c.l.bf16 %v464_v28 }
  0x24   :  { %v244_v38 = vadd.f32 %v432_v22, %v148_v29  ;;  %v149_v39 = vadd.f32 %v528_v7, %v110_v30  ;;  %305 = vst [vmem:[%s778_s4 + $0x90] sm:$0xff] %v273_v34  ;;  %v275_v44 = vmax.f32 %v243_v36, 0.0  ;;  %v439_v45 = vunpack.c.l.bf16 %v479_v33 }
  0x25   :  { %306 = vst [vmem:[%s778_s4 + $0x98] sm:$0xff] %v274_v35  ;;  %v376_v46 = vunpack.c.h.bf16 %v464_v28  ;;  %v440_v47 = vunpack.c.h.bf16 %v479_v33  ;;  %v150_v50 = vadd.f32 %v528_v7, %v111_v40  ;;  %v112_v51 = vmul.f32 %v375_v41, %v514_v1 }
  0x26   :  { %v276_v48 = vmax.f32 %v244_v38, 0.0  ;;  %v245_v49 = vadd.f32 %v435_v31, %v149_v39  ;;  %307 = vst [vmem:[%s778_s4 + $0xa0] sm:$0xff] %v275_v44  ;;  %v379_v54 = vunpack.c.l.bf16 %v465_v42  ;;  %v443_v55 = vunpack.c.l.bf16 %v480_v43 }
  0x27   :  { %v113_v53 = vmul.f32 %v376_v46, %v514_v1  ;;  %v380_v56 = vunpack.c.h.bf16 %v465_v42  ;;  %v246_v59 = vadd.f32 %v436_v37, %v150_v50  ;;  %v151_v60 = vadd.f32 %v528_v7, %v112_v51 }
  0x28   :  { %308 = vst [vmem:[%s778_s4 + $0xa8] sm:$0xff] %v276_v48  ;;  %v277_v58 = vmax.f32 %v245_v49, 0.0  ;;  %v444_v61 = vunpack.c.h.bf16 %v480_v43  ;;  %v114_v63 = vmul.f32 %v379_v54, %v514_v1  ;;  %v383_v2 = vunpack.c.l.bf16 %v466_v52 }
  0x29   :  { %v152_v62 = vadd.f32 %v528_v7, %v113_v53  ;;  %v115_v0 = vmul.f32 %v380_v56, %v514_v1  ;;  %v278_v4 = vmax.f32 %v246_v59, 0.0  ;;  %v247_v5 = vadd.f32 %v439_v45, %v151_v60 }
  0x2a   :  { %309 = vst [vmem:[%s778_s4 + $0xb0] sm:$0xff] %v277_v58  ;;  %v447_v6 = vunpack.c.l.bf16 %v481_v57  ;;  %v384_v8 = vunpack.c.h.bf16 %v466_v52  ;;  %v153_v10 = vadd.f32 %v528_v7, %v114_v63  ;;  %v116_v12 = vmul.f32 %v383_v2, %v514_v1 }
  0x2b   :  { %v248_v9 = vadd.f32 %v440_v47, %v152_v62  ;;  %v154_v11 = vadd.f32 %v528_v7, %v115_v0  ;;  %310 = vst [vmem:[%s778_s4 + $0xb8] sm:$0xff] %v278_v4  ;;  %v279_v14 = vmax.f32 %v247_v5, 0.0  ;;  %v448_v16 = vunpack.c.h.bf16 %v481_v57 }
  0x2c   :  { %v117_v15 = vmul.f32 %v384_v8, %v514_v1  ;;  %v387_v17 = vunpack.c.l.bf16 %v467_v3  ;;  %v249_v19 = vadd.f32 %v443_v55, %v153_v10  ;;  %v155_v21 = vadd.f32 %v528_v7, %v116_v12 }
  0x2d   :  { %v280_v18 = vmax.f32 %v248_v9, 0.0  ;;  %v250_v20 = vadd.f32 %v444_v61, %v154_v11  ;;  %311 = vst [vmem:[%s778_s4 + $0xc0] sm:$0xff] %v279_v14  ;;  %v451_v24 = vunpack.c.l.bf16 %v482_v13  ;;  %v388_v25 = vunpack.c.h.bf16 %v467_v3 }
  0x2e   :  { %v156_v22 = vadd.f32 %v528_v7, %v117_v15  ;;  %v118_v23 = vmul.f32 %v387_v17, %v514_v1  ;;  %v281_v26 = vmax.f32 %v249_v19, 0.0  ;;  %v251_v28 = vadd.f32 %v447_v6, %v155_v21 }
  0x2f   :  { %312 = vst [vmem:[%s778_s4 + $0xc8] sm:$0xff] %v280_v18  ;;  %v282_v27 = vmax.f32 %v250_v20, 0.0  ;;  %v119_v31 = vmul.f32 %v388_v25, %v514_v1  ;;  %v452_v32 = vunpack.c.h.bf16 %v482_v13 }
  0x30   :  { %v252_v29 = vadd.f32 %v448_v16, %v156_v22  ;;  %v157_v30 = vadd.f32 %v528_v7, %v118_v23  ;;  %313 = vst [vmem:[%s778_s4 + $0xd0] sm:$0xff] %v281_v26  ;;  %v283_v33 = vmax.f32 %v251_v28, 0.0 }
  0x31   :  { %314 = vst [vmem:[%s778_s4 + $0xd8] sm:$0xff] %v282_v27  ;;  %v158_v36 = vadd.f32 %v528_v7, %v119_v31 }
  0x32   :  { %v284_v34 = vmax.f32 %v252_v29, 0.0  ;;  %v253_v35 = vadd.f32 %v451_v24, %v157_v30  ;;  %315 = vst [vmem:[%s778_s4 + $0xe0] sm:$0xff] %v283_v33 }
  0x33   :  { %v254_v37 = vadd.f32 %v452_v32, %v158_v36 }
  0x34   :  { %316 = vst [vmem:[%s778_s4 + $0xe8] sm:$0xff] %v284_v34  ;;  %v285_v1 = vmax.f32 %v253_v35, 0.0 }
  0x35   :  { %v286_v38 = vmax.f32 %v254_v37, 0.0 }
  0x36   :  { %317 = vst [vmem:[%s778_s4 + $0xf0] sm:$0xff] %v285_v1 }
  0x37   :  { %318 = vst [vmem:[%s778_s4 + $0xf8] sm:$0xff] %v286_v38 }

</bundles_post_ra>
